<compile_context>
chip_gen: v6e
topology: v6e:2x2x1
jax: 0.10.0
libtpu: 0.0.40
codegen_flags: <defaults>
</compile_context>

<pallas_src>
import jax
import jax.numpy as jnp
from jax.experimental import pallas as pl
from jax.experimental.pallas import tpu as pltpu


# ------------------------- deterministic parameter setup -------------------------
def make_params():
    key = jax.random.PRNGKey(0)
    k = jax.random.split(key, 4)
    # rt_ parameter: [NEG_R1n, NEG_k1, NEG_R3n, NEG_k2, NEG_R5n, NEG_Wn, NEG_Ln]
    rt_ = jnp.array([0.1, -0.2, 0.3, -0.4, 0.5, 0.05, -0.15], jnp.float32)
    # physical ranges for [R1, R2, R3, R4, R5, W, L, k1, k2, k3]
    X_min = jnp.array([1e3, 1e3, 1e3, 1e3, 1e3, 1e-6, 1e-6, 0.0, 0.0, 0.0], jnp.float32)
    X_max = jnp.array([1e5, 1e5, 1e5, 1e5, 1e5, 1e-4, 1e-4, 1.0, 1.0, 1.0], jnp.float32)
    # output ranges for eta = [eta0, eta1, eta2, eta3]
    Y_min = jnp.array([-0.1, 0.5, 0.0, 1.0], jnp.float32)
    Y_max = jnp.array([0.1, 1.5, 1.0, 5.0], jnp.float32)
    # synthetic eta_estimator MLP: 10 -> 32 -> 4
    H = 32
    W1 = jax.random.normal(k[0], (10, H), jnp.float32) * 0.3
    b1 = jax.random.normal(k[1], (H,), jnp.float32) * 0.1
    W2 = jax.random.normal(k[2], (H, 4), jnp.float32) * 0.3
    b2 = jax.random.normal(k[3], (4,), jnp.float32) * 0.1
    return dict(rt_=rt_, X_min=X_min, X_max=X_max, Y_min=Y_min, Y_max=Y_max,
                W1=W1, b1=b1, W2=W2, b2=b2)


# ----------------------- RT chain + eta estimator (plain JAX glue) ----------------
def compute_eta(p):
    rt_temp = jax.nn.sigmoid(p["rt_"])                                   # (7,)
    RTn = jnp.zeros((10,), jnp.float32)
    RTn = (RTn.at[0].set(rt_temp[0]).at[2].set(rt_temp[2]).at[4].set(rt_temp[4])
              .at[5].set(rt_temp[5]).at[6].set(rt_temp[6]))
    RT10 = RTn * (p["X_max"] - p["X_min"]) + p["X_min"]                  # (10,)
    R2 = RT10[0] * rt_temp[1]
    R4 = RT10[2] * rt_temp[3]
    RT_full = jnp.stack([RT10[0], R2, RT10[2], R4, RT10[4], RT10[5], RT10[6]])  # (7,)

    # RT property: clamp to [X_min, X_max]; the straight-through estimator is the
    # identity in the forward value.
    RT_pad = jnp.zeros((10,), jnp.float32).at[:7].set(RT_full)
    RT_c = jnp.clip(RT_pad, p["X_min"], p["X_max"])[:7]

    R1, R2c, R3, R4c, R5, W, L = (RT_c[i] for i in range(7))
    RT_extend = jnp.stack([R1, R2c, R3, R4c, R5, W, L, R2c / R1, R4c / R3, L / W])
    RTn_extend = (RT_extend - p["X_min"]) / (p["X_max"] - p["X_min"])    # (10,)

    h = jnp.tanh(RTn_extend @ p["W1"] + p["b1"])
    eta_n = jax.nn.sigmoid(h @ p["W2"] + p["b2"])                        # (4,)
    eta = eta_n * (p["Y_max"] - p["Y_min"]) + p["Y_min"]                 # (4,)
    return eta


# ------------------------------- Pallas hot-path kernel ---------------------------
def _invrt_kernel(coef_ref, z_ref, o_ref):
    # coef_ref: scalar-prefetched SMEM (4,) f32 pre-folded scalars [a, b, s, c]
    #   a = -eta0, b = -eta1, s = eta3, c = -eta2*eta3
    # so: a + b*tanh(z*s + c) == -(eta0 + eta1*tanh((z - eta2)*eta3))
    a = coef_ref[0]
    b = coef_ref[1]
    s = coef_ref[2]
    c = coef_ref[3]
    z = z_ref[...].astype(jnp.float32)
    o_ref[...] = (a + b * jnp.tanh(z * s + c)).astype(o_ref.dtype)


# ------------------------------ layout / tiling helpers ---------------------------
_TILE_BYTES = 4 * 1024 * 1024        # ~4 MiB tile: roofline plateau, v7x-safe
_TINY_BYPASS_BYTES = 512 * 1024      # below this, plain jnp beats kernel launch cost


def _choose_cols(n):
    """Lane-dense slab width: prefer a multiple of 128 that divides n (no padding)."""
    for c in (2048, 1024, 512, 256, 128):
        if n % c == 0:
            return c, 0
    c = 512
    pad = (-n) % c
    return c, pad


def _choose_rows(rows, cols, itemsize, sublane):
    """Largest sublane-aligned row tile under the byte budget; split into >=2 row
    blocks when the whole array would otherwise fit one tile (v7x dual-TC)."""
    max_rows = max(sublane, (_TILE_BYTES // (cols * itemsize)) // sublane * sublane)
    if rows > max_rows:
        return max_rows
    if rows > 2 * sublane:
        half = -(-rows // 2)
        br = -(-half // sublane) * sublane
        if br < rows:
            return br
    return rows  # full extent (allowed even if not a multiple of the sublane)


def invrt_forward(z, params):
    eta = compute_eta(params).astype(jnp.float32)
    # Fold the affine algebra into 4 scalars (saves a subtract + negate per vreg).
    coef = jnp.stack([-eta[0], -eta[1], eta[3], -eta[2] * eta[3]]).astype(jnp.float32)

    orig_shape = z.shape
    n = int(z.size)
    itemsize = jnp.dtype(z.dtype).itemsize

    # Tiny-input bypass: launch + DMA setup overhead dominates below ~0.5 MiB.
    if n * itemsize < _TINY_BYPASS_BYTES:
        out = coef[0] + coef[1] * jnp.tanh(z.astype(jnp.float32) * coef[2] + coef[3])
        return out.astype(z.dtype)

    # Flatten into a lane/sublane-dense (R, C) slab; pad the tail if needed.
    cols, pad = _choose_cols(n)
    zf = z.reshape(-1)
    if pad:
        zf = jnp.pad(zf, (0, pad))
    rows = (n + pad) // cols
    z2 = zf.reshape(rows, cols)

    sublane = 16 if z2.dtype == jnp.bfloat16 else 8
    block_rows = _choose_rows(rows, cols, itemsize, sublane)
    grid = (pl.cdiv(rows, block_rows),)

    out2 = pl.pallas_call(
        _invrt_kernel,
        out_shape=jax.ShapeDtypeStruct((rows, cols), z2.dtype),
        grid_spec=pltpu.PrefetchScalarGridSpec(
            num_scalar_prefetch=1,                       # coef -> SMEM, once
            grid=grid,
            in_specs=[
                # Full-width contiguous row slabs (single DMA run per tile).
                pl.BlockSpec((block_rows, cols), lambda i, coef: (i, 0)),
            ],
            out_specs=pl.BlockSpec((block_rows, cols), lambda i, coef: (i, 0)),
        ),
        compiler_params=pltpu.CompilerParams(
            dimension_semantics=("parallel",),
            vmem_limit_bytes=32 * 1024 * 1024,
        ),
    )(coef, z2)

    out = out2.reshape(-1)
    if pad:
        out = out[:n]
    return out.reshape(orig_shape)


# --------------------------------------- main -------------------------------------
if __name__ == "__main__":
    params = make_params()
    key = jax.random.PRNGKey(0)
    k1, k2 = jax.random.split(key)

    # 1 MiB f32 input -> exercises the Pallas path (split into 2 row blocks).
    z_big = jax.random.normal(k1, (256, 1024), jnp.float32)
    out_big = jax.block_until_ready(invrt_forward(z_big, params))

    # Odd 3-D shape above the bypass threshold -> exercises flatten + tail padding.
    z_odd = jax.random.normal(k2, (7, 999, 33), jnp.float32)
    out_odd = jax.block_until_ready(invrt_forward(z_odd, params))

    # pure-JAX reference check
    eta = compute_eta(params)

    def ref_fn(zz):
        return -(eta[0] + eta[1] * jnp.tanh((zz - eta[2]) * eta[3]))

    assert out_big.shape == z_big.shape and out_big.dtype == z_big.dtype
    assert jnp.allclose(out_big, ref_fn(z_big), atol=1e-5, rtol=1e-5)
    assert out_odd.shape == z_odd.shape and out_odd.dtype == z_odd.dtype
    assert jnp.allclose(out_odd, ref_fn(z_odd), atol=1e-5, rtol=1e-5)

    print("KERNEL_OK")
</pallas_src>

<mosaic_0001>
module attributes {stable_mosaic.version = 11 : i64} {
  func.func @_invrt_kernel(%arg0: i32, %arg1: memref<4xf32, #tpu.memory_space<smem>>, %arg2: memref<64x2048xf32, #tpu.memory_space<vmem>>, %arg3: memref<64x2048xf32, #tpu.memory_space<vmem>>) attributes {dimension_semantics = [#tpu.dimension_semantics<parallel>], iteration_bounds = array<i64: 2>, scalar_prefetch = 1 : i64, scratch_operands = 0 : i64, tpu.core_type = #tpu.core_type<tc>, window_params = [{transform_indices = @transform_0, window_bounds = array<i64: 64, 2048>}, {transform_indices = @transform_1, window_bounds = array<i64: 64, 2048>}]} {
    %c0 = arith.constant 0 : index
    %0 = memref.load %arg1[%c0] : memref<4xf32, #tpu.memory_space<smem>>
    %c1 = arith.constant 1 : index
    %1 = memref.load %arg1[%c1] : memref<4xf32, #tpu.memory_space<smem>>
    %c2 = arith.constant 2 : index
    %2 = memref.load %arg1[%c2] : memref<4xf32, #tpu.memory_space<smem>>
    %c3 = arith.constant 3 : index
    %3 = memref.load %arg1[%c3] : memref<4xf32, #tpu.memory_space<smem>>
    %c0_0 = arith.constant 0 : index
    %c0_1 = arith.constant 0 : index
    %4 = vector.load %arg2[%c0_0, %c0_1] : memref<64x2048xf32, #tpu.memory_space<vmem>>, vector<64x2048xf32>
    %5 = vector.broadcast %2 : f32 to vector<64x2048xf32>
    %6 = arith.mulf %4, %5 : vector<64x2048xf32>
    %7 = vector.broadcast %3 : f32 to vector<64x2048xf32>
    %8 = arith.addf %6, %7 : vector<64x2048xf32>
    %9 = math.tanh %8 : vector<64x2048xf32>
    %10 = vector.broadcast %1 : f32 to vector<64x2048xf32>
    %11 = arith.mulf %10, %9 : vector<64x2048xf32>
    %12 = vector.broadcast %0 : f32 to vector<64x2048xf32>
    %13 = arith.addf %12, %11 : vector<64x2048xf32>
    %c0_2 = arith.constant 0 : index
    %c0_3 = arith.constant 0 : index
    %14 = vector.load %arg3[%c0_2, %c0_3] : memref<64x2048xf32, #tpu.memory_space<vmem>>, vector<64x2048xf32>
    tpu.vector_store %arg3[%c0_2, %c0_3], %13 {strides = array<i32>} : memref<64x2048xf32, #tpu.memory_space<vmem>>, vector<64x2048xf32>,
    return
  }
  func.func @transform_0(%arg0: i32, %arg1: memref<4xf32, #tpu.memory_space<smem>>) -> (i32, i32) {
    %c0_i32 = arith.constant 0 : i32
    %c0_i32_0 = arith.constant 0 : i32
    return %arg0, %c0_i32 : i32, i32
  }
  func.func @transform_1(%arg0: i32, %arg1: memref<4xf32, #tpu.memory_space<smem>>) -> (i32, i32) {
    %c0_i32 = arith.constant 0 : i32
    %c0_i32_0 = arith.constant 0 : i32
    return %arg0, %c0_i32 : i32, i32
  }
}

</mosaic_0001>

<bundles_post_ra>
// kernel: tpu_custom_call.1
= control target key start
LH: loop header
LB: loop body
LE: loop exit
PB: predicated region body
PF: predicated region fallthrough
CT: control target
= control target key end

     0   :  { %s1569_s9 = smov [#allocation3]   ;;  %s2578_s0 = inlined_call_operand.hbm [shape: f32[4], index: 0, kind: input, shape index: {}]   ;;  %s2579_s1 = inlined_call_operand.hbm [shape: f32[128,2048], index: 1, kind: input, shape index: {}]   ;;  %s2580_s2 = inlined_call_operand.hbm [shape: f32[128,2048], index: 2, kind: output, shape index: {}]  }
   0x1   :  { %8 = dma.hbm_to_smem %s2578_s0, 16, %s1569_s9, [#allocation2] }
   0x2   :  { %1543 = dma.done.wait [#allocation2], 16 }
   0x3   :  { %1544 = vsyncadd [#allocation2], 4294967280 }
   0x4   :  { %10 = sfence }
   0x5   :  { %11 = vsyncpa [#allocation5], 0 }
   0x6   :  { %13 = vsyncpa [#allocation5 + $0x1], 0 }
   0x7   :  { %14 = vsyncpa [#allocation6], 0 }
   0x8   :  { %16 = vsyncpa [#allocation6 + $0x1], 0  ;;  %s1594_s12 = smov 0   ;;  %s1596_s13 = smov 0  }
   0x9   :  { %s1598_s14 = smov 0   ;;  %s1600_s15 = smov 0  }
   0xa LB: > { %s1615_s0 = sadd.s32 4294967295, %s1567_s15   ;;  %s1135_s16 = sadd.s32 4294967294, %s1567_s15   ;;  %s1567_s15 = sphi %s1600_s15, %s2595_s15   ;;  %s1563_s14 = sphi %s1598_s14, %s2594_s14   ;;  %s1559_s13 = sphi %s1596_s13, %s2593_s13   ;;  %s1555_s12 = sphi %s1594_s12, %s2592_s12  }
   0xb   : > { %s1619_s17 = sadd.s32 1, %s1567_s15   ;;  %s29_s18 = sadd.s32 1, %s1563_s14 }
   0xc   : > { %s26_s19 = ssub.s32 %s1567_s15, %s1619_s17  ;;  %p36_p0 = scmp.ne.s32.totalorder %s1563_s14, %s1559_s13 }
   0xd   : > { %p27_p1 = scmp.eq.s32.totalorder %s26_s19, 0  ;;  %p37_p2 = scmp.eq.s32.totalorder %s1567_s15, 0 }
   0xe   : > { %p42_p3 = scmp.ne.s32.totalorder %s1559_s13, %s1555_s12  ;;  %p43_p4 = scmp.eq.s32.totalorder %s1615_s0, 0 }
   0xf   : > { %s1631_s20 = scalar_select %p27_p1, %s1563_s14, %s29_s18  }
  0x10   : > { %p1633_p5 = por %p37_p2, %p36_p0  ;;  %p1637_p6 = por %p43_p4, %p42_p3 }
  0x11   : > { %p66_p7 = scmp.eq.s32.totalorder %s1615_s0, 1  ;;  %p72_p8 = scmp.eq.s32.totalorder %s1135_s16, 1 }
  0x12   : > { %s2584_s22 = scalar_select %p1637_p6, 1, 0 }
  0x13   : > { %p1170_p10 = scmp.lt.s32.totalorder %s1567_s15, 2  ;;  %p1644_p11 = por %p66_p7, %p36_p0 }
  0x14   : > { %p1648_p12 = por %p72_p8, %p42_p3  ;;  %s92_s25 = sand.u32 1, %s1563_s14  }
  0x15   : > { %s2585_s23 = scalar_select %p1644_p11, 1, 0 }
  0x16   : > { %s2586_s24 = scalar_select %p1648_p12, 1, 0 }
  0x17   : > { %s1155_s26 = sshll.u32 %s1567_s15, 14  ;;  %s1138_s27 = sshll.u32 %s92_s25, 10 }
  0x18   : > { %s1657_s30 = scalar_lea.hbm %s2579_s1, %s1155_s26  ;;  %s96_s3 = scalar_lea.vmem [#allocation4], %s1138_s27 }
  0x19   : > { %s104_s4 = sshll.u32 %s96_s3, 4  ;;  %p1661_p13 = pnand %p1170_p10, %p1633_p5  ;;  %s1665_s4 = int_to_ptr.vmem [resolvable:$true] %s104_s4 }
  0x1a   : > { %s1667_s6 = scalar_lea.sflag [#allocation5], %s92_s25  ;;  %s1473_s7 = scalar_lea.hbm %s1657_s30, 16384 }
  0x1b   : > { %p1474_p0 = scmp.ne.s32.totalorder %s1657_s30, %s1473_s7  ;;  %p1475_p1 = pneg %p1661_p13 }
  0x1c   : > { %s1478_s10 = scalar_lea.hbm %s2579_s1, 32768  ;;  %p1479_p4 = scmp.lt.s32.totalorder %s1657_s30, %s2579_s1 }
  0x1d   : > { %p1476_p2 = pnand %p1475_p1, %p1474_p0  ;;  %p1480_p5 = scmp.lt.s32.totalorder %s1478_s10, %s1473_s7 }
  0x1f   : > { %p1477_p3 = pneg %p1476_p2  ;;  %p1481_p7 = por %p1480_p5, %p1479_p4 }
  0x21   : > { %p1482_p8 = pnand %p1481_p7, %p1477_p3 }
  0x23   : > { %1485 = shalt.err (!%p1482_p8)
}
  0x24   : > { %s1486_s18 = scalar_lea.vmem %s1665_s4, 16384  ;;  %s1570_s19 = smov [#allocation4]  }
  0x25   : > { %p1487_p10 = scmp.ne.s32.totalorder %s1665_s4, %s1486_s18  ;;  %s1491_s21 = sshll.u32 %s1570_s19, 4  ;;  %s1492_s21 = int_to_ptr.vmem [resolvable:$false] %s1491_s21 }
  0x26   : > { %s1493_s25 = scalar_lea.vmem %s1492_s21, 32768  ;;  %p1494_p2 = scmp.lt.s32.totalorder %s1665_s4, %s1492_s21 }
  0x27   : > { %p1489_p9 = pnand %p1487_p10, %p1475_p1  ;;  %p1495_p12 = scmp.lt.s32.totalorder %s1493_s25, %s1486_s18 }
  0x29   : > { %p1490_p0 = pneg %p1489_p9  ;;  %p1496_p11 = por %p1495_p12, %p1494_p2 }
  0x2b   : > { %p1497_p6 = pnand %p1496_p11, %p1490_p0 }
  0x2d   : > { %1500 = shalt.err (!%p1497_p6)
}
  0x2e   : > { %s1571_s26 = smov 2048   ;;  %s1572_s27 = smov 128  }
  0x2f   : > { %1165 = dma.hbm_to_vmem [thread:$0]  (!%p1661_p13), %s1657_s30, 16384, %s1665_s4, %s1667_s6, %s1571_s26, %s1571_s26, %s1572_s27  }
  0x30   : > { %p1142_p9 = scmp.ge.s32.totalorder %s1567_s15, 1  ;;  %p112_p1 = scmp.lt.s32.totalorder %s1567_s15, 3 }
  0x32   : > { %p113_p3 = pnand %p1142_p9, %p112_p1 }
  0x33   : > { %s1691_s28 = sand.u32 (!%p113_p3), 1, %s1559_s13   ;;  %p2588_p6 = scmp.ne.s32.totalorder (!%p113_p3), %s2584_s22, 0 }
  0x34   : > { %116 = sbr.rel (%p113_p3) target bundleno = 254 (0xfe), region = 24  ;;  %s1143_s29 = sshll.u32 (!%p113_p3), %s1691_s28, 10 }
  0x35   : > { %s119_s3 = scalar_lea.sflag (!%p113_p3), [#allocation5], %s1691_s28  ;;  %s1697_s7 = scalar_lea.vmem (!%p113_p3), [#allocation4], %s1143_s29 }
  0x39   : > { %1546 = dma.done.wait (%p2588_p6), %s119_s3, 16384  }
  0x3a   : > { %1548 = vsyncadd (%p2588_p6), %s119_s3, 4294950912  ;;  %s143_s30 = sld [smem:[#allocation3]]  ;;  %v147_v0 = vld [vmem:[%s1697_s7] sm:$0xff]  ;;  %v148_v1 = vld [vmem:[%s1697_s7 + $0x8] sm:$0xff]  ;;  %s1837_s22 = scalar_lea.vmem [#allocation7], %s1143_s29 }
  0x3b   : > { %s1145_s4 = sld [smem:[#allocation3 + $0x1]]  ;;  %v149_v2 = vld [vmem:[%s1697_s7 + $0x10] sm:$0xff]  ;;  %v150_v4 = vld [vmem:[%s1697_s7 + $0x18] sm:$0xff]  ;;  %v151_v5 = vld [vmem:[%s1697_s7 + $0x20] sm:$0xff]  ;;  %s1157_s8 = sshll.u32 %s1615_s0, 14 }
  0x3c   : > { %s1146_s5 = sld [smem:[#allocation3 + $0x2]]  ;;  %v152_v6 = vld [vmem:[%s1697_s7 + $0x28] sm:$0xff]  ;;  %v153_v9 = vld [vmem:[%s1697_s7 + $0x30] sm:$0xff]  ;;  %v154_v10 = vld [vmem:[%s1697_s7 + $0x38] sm:$0xff]  ;;  %s1062_s9 = sshll.u32 %s1837_s22, 4  ;;  %s2531_s9 = int_to_ptr.vmem [resolvable:$true] %s1062_s9 }
  0x3d   : > { %s1147_s6 = sld [smem:[#allocation3 + $0x3]]  ;;  %v155_v19 = vld [vmem:[%s1697_s7 + $0x40] sm:$0xff]  ;;  %v156_v20 = vld [vmem:[%s1697_s7 + $0x48] sm:$0xff]  ;;  %v157_v25 = vld [vmem:[%s1697_s7 + $0x50] sm:$0xff]  ;;  %s2529_s0 = scalar_lea.hbm %s2580_s2, %s1157_s8 }
  0x3e   : > { %v158_v26 = vld [vmem:[%s1697_s7 + $0x58] sm:$0xff]  ;;  %v159_v27 = vld [vmem:[%s1697_s7 + $0x60] sm:$0xff]  ;;  %v160_v32 = vld [vmem:[%s1697_s7 + $0x68] sm:$0xff]  ;;  %s1048_s16 = scalar_lea.sflag [#allocation6], %s1691_s28  ;;  %s1501_s18 = scalar_lea.vmem %s2531_s9, 16384 }
  0x3f   : > { %v161_v39 = vld [vmem:[%s1697_s7 + $0x70] sm:$0xff]  ;;  %v162_v40 = vld [vmem:[%s1697_s7 + $0x78] sm:$0xff]  ;;  %v163_v44 = vld [vmem:[%s1697_s7 + $0x80] sm:$0xff]  ;;  %p1502_p11 = scmp.ne.s32.totalorder %s2531_s9, %s1501_s18  ;;  %p2589_p12 = scmp.ne.s32.totalorder %s2585_s23, 0 }
  0x40   : > { %v1706_v3 = vstv %s143_s30  ;;  %v164_v45 = vld [vmem:[%s1697_s7 + $0x88] sm:$0xff]  ;;  %v165_v46 = vld [vmem:[%s1697_s7 + $0x90] sm:$0xff]  ;;  %v166_v50 = vld [vmem:[%s1697_s7 + $0x98] sm:$0xff]  ;;  %s1573_s19 = smov [#allocation7]  }
  0x41   : > { %v1713_v8 = vstv %s1145_s4  ;;  %v167_v57 = vld [vmem:[%s1697_s7 + $0xa0] sm:$0xff]  ;;  %v168_v58 = vld [vmem:[%s1697_s7 + $0xa8] sm:$0xff]  ;;  %v169_v62 = vld [vmem:[%s1697_s7 + $0xb0] sm:$0xff]  ;;  %p1503_p13 = pnand %p1502_p11, %p2589_p12  ;;  %s1505_s21 = sshll.u32 %s1573_s19, 4  ;;  %s1506_s21 = int_to_ptr.vmem [resolvable:$false] %s1505_s21 }
  0x42   : > { %v1711_v7 = vstv %s1146_s5  ;;  %v170_v63 = vld [vmem:[%s1697_s7 + $0xb8] sm:$0xff]  ;;  %s1507_s25 = scalar_lea.vmem %s1506_s21, 32768  ;;  %p1508_p5 = scmp.lt.s32.totalorder %s2531_s9, %s1506_s21 }
  0x43   : > { %v276_v11 = vmul.f32 %v1711_v7, %v147_v0  ;;  %v1718_v12 = vstv %s1147_s6  ;;  %v277_v13 = vmul.f32 %v1711_v7, %v148_v1  ;;  %v278_v14 = vmul.f32 %v1711_v7, %v149_v2  ;;  %v171_v0 = vld [vmem:[%s1697_s7 + $0xc0] sm:$0xff]  ;;  %p1504_p4 = pneg %p1503_p13  ;;  %p1509_p7 = scmp.lt.s32.totalorder %s1507_s25, %s1501_s18 }
  0x44   : > { %v279_v15 = vmul.f32 %v1711_v7, %v150_v4  ;;  %v280_v16 = vmul.f32 %v1711_v7, %v151_v5  ;;  %v281_v17 = vmul.f32 %v1711_v7, %v152_v6  ;;  %v282_v18 = vmul.f32 %v1711_v7, %v153_v9  ;;  %v172_v5 = vld [vmem:[%s1697_s7 + $0xc8] sm:$0xff] }
  0x45   : > { %v405_v21 = vadd.f32 %v1718_v12, %v276_v11  ;;  %v406_v22 = vadd.f32 %v1718_v12, %v277_v13  ;;  %v407_v23 = vadd.f32 %v1718_v12, %v278_v14  ;;  %v283_v24 = vmul.f32 %v1711_v7, %v154_v10  ;;  %p1510_p8 = por %p1509_p7, %p1508_p5 }
  0x46   : > { %v408_v28 = vadd.f32 %v1718_v12, %v279_v15  ;;  %v409_v29 = vadd.f32 %v1718_v12, %v280_v16  ;;  %v410_v30 = vadd.f32 %v1718_v12, %v281_v17  ;;  %v411_v31 = vadd.f32 %v1718_v12, %v282_v18  ;;  %v173_v15 = vld [vmem:[%s1697_s7 + $0xd0] sm:$0xff]  ;;  %v174_v16 = vld [vmem:[%s1697_s7 + $0xd8] sm:$0xff] }
  0x47   : > { %1209 = vtanh.f32 %v405_v21  ;;  %v412_v33 = vadd.f32 %v1718_v12, %v283_v24  ;;  %v284_v34 = vmul.f32 %v1711_v7, %v155_v19  ;;  %v285_v35 = vmul.f32 %v1711_v7, %v156_v20  ;;  %v175_v20 = vld [vmem:[%s1697_s7 + $0xe0] sm:$0xff]  ;;  %v176_v21 = vld [vmem:[%s1697_s7 + $0xe8] sm:$0xff]  ;;  %p1511_p10 = pnand %p1510_p8, %p1504_p4 }
  0x48   : > { %1211 = vtanh.f32 %v406_v22  ;;  %v286_v36 = vmul.f32 %v1711_v7, %v157_v25  ;;  %v287_v37 = vmul.f32 %v1711_v7, %v158_v26  ;;  %v288_v38 = vmul.f32 %v1711_v7, %v159_v27  ;;  %v177_v22 = vld [vmem:[%s1697_s7 + $0xf0] sm:$0xff] }
  0x49   : > { %1213 = vtanh.f32 %v407_v23  ;;  %v413_v41 = vadd.f32 %v1718_v12, %v284_v34  ;;  %v414_v42 = vadd.f32 %v1718_v12, %v285_v35  ;;  %v289_v43 = vmul.f32 %v1711_v7, %v160_v32 }
  0x4a   : > { %1215 = vtanh.f32 %v408_v28  ;;  %v415_v47 = vadd.f32 %v1718_v12, %v286_v36  ;;  %v416_v48 = vadd.f32 %v1718_v12, %v287_v37  ;;  %v417_v49 = vadd.f32 %v1718_v12, %v288_v38  ;;  %v178_v37 = vld [vmem:[%s1697_s7 + $0xf8] sm:$0xff] }
  0x4b   : > { %1217 = vtanh.f32 %v409_v29  ;;  %v418_v51 = vadd.f32 %v1718_v12, %v289_v43  ;;  %v290_v52 = vmul.f32 %v1711_v7, %v161_v39  ;;  %v291_v53 = vmul.f32 %v1711_v7, %v162_v40 }
  0x4c   : > { %1219 = vtanh.f32 %v410_v30  ;;  %v292_v54 = vmul.f32 %v1711_v7, %v163_v44  ;;  %v293_v55 = vmul.f32 %v1711_v7, %v164_v45  ;;  %v294_v56 = vmul.f32 %v1711_v7, %v165_v46 }
  0x4d   : > { %1221 = vtanh.f32 %v411_v31  ;;  %v419_v59 = vadd.f32 %v1718_v12, %v290_v52  ;;  %v420_v60 = vadd.f32 %v1718_v12, %v291_v53  ;;  %v295_v61 = vmul.f32 %v1711_v7, %v166_v50 }
  0x4e   : > { %1223 = vtanh.f32 %v412_v33  ;;  %v421_v1 = vadd.f32 %v1718_v12, %v292_v54  ;;  %v422_v2 = vadd.f32 %v1718_v12, %v293_v55  ;;  %v423_v4 = vadd.f32 %v1718_v12, %v294_v56  ;;  %v180_v55 = vld [vmem:[%s1697_s7 + $0x108] sm:$0xff] }
  0x4f   : > { %1225 = vtanh.f32 %v413_v41  ;;  %v1777_v6 = vadd.f32 %v1718_v12, %v295_v61  ;;  %v296_v9 = vmul.f32 %v1711_v7, %v167_v57  ;;  %v297_v10 = vmul.f32 %v1711_v7, %v168_v58 }
  0x50   : > { %1227 = vtanh.f32 %v414_v42  ;;  %v298_v11 = vmul.f32 %v1711_v7, %v169_v62  ;;  %v299_v13 = vmul.f32 %v1711_v7, %v170_v63  ;;  %v300_v14 = vmul.f32 %v1711_v7, %v171_v0  ;;  %v179_v42 = vld [vmem:[%s1697_s7 + $0x100] sm:$0xff] }
  0x51   : > { %1229 = vtanh.f32 %v415_v47  ;;  %v425_v17 = vadd.f32 %v1718_v12, %v296_v9  ;;  %v1788_v18 = vadd.f32 %v1718_v12, %v297_v10  ;;  %v301_v19 = vmul.f32 %v1711_v7, %v172_v5 }
  0x52   : > { %1231 = vtanh.f32 %v416_v48  ;;  %v1795_v23 = vadd.f32 %v1718_v12, %v298_v11  ;;  %v1798_v24 = vadd.f32 %v1718_v12, %v299_v13  ;;  %v1801_v25 = vadd.f32 %v1718_v12, %v300_v14  ;;  %v182_v13 = vld [vmem:[%s1697_s7 + $0x118] sm:$0xff] }
  0x53   : > { %1233 = vtanh.f32 %v417_v49  ;;  %v1804_v26 = vadd.f32 %v1718_v12, %v301_v19  ;;  %v302_v27 = vmul.f32 %v1711_v7, %v173_v15  ;;  %v303_v28 = vmul.f32 %v1711_v7, %v174_v16 }
  0x54   : > { %v1210_v29 = vpop.eup %1209  ;;  %1235 = vtanh.f32 %v418_v51  ;;  %v304_v30 = vmul.f32 %v1711_v7, %v175_v20  ;;  %v305_v31 = vmul.f32 %v1711_v7, %v176_v21  ;;  %v306_v32 = vmul.f32 %v1711_v7, %v177_v22 }
  0x55   : > { %v1212_v33 = vpop.eup %1211  ;;  %v662_v34 = vmul.f32 %v1210_v29, %v1713_v8  ;;  %1237 = vtanh.f32 %v419_v59  ;;  %v1813_v35 = vadd.f32 %v1718_v12, %v302_v27  ;;  %v1816_v36 = vadd.f32 %v1718_v12, %v303_v28 }
  0x56   : > { %v1214_v38 = vpop.eup %1213  ;;  %v663_v39 = vmul.f32 %v1212_v33, %v1713_v8  ;;  %1239 = vtanh.f32 %v420_v60  ;;  %v1821_v40 = vadd.f32 %v1718_v12, %v304_v30  ;;  %v1824_v41 = vadd.f32 %v1718_v12, %v305_v31  ;;  %v181_v60 = vld [vmem:[%s1697_s7 + $0x110] sm:$0xff] }
  0x57   : > { %v1216_v43 = vpop.eup %1215  ;;  %v791_v44 = vadd.f32 %v1706_v3, %v662_v34  ;;  %v664_v45 = vmul.f32 %v1214_v38, %v1713_v8  ;;  %1241 = vtanh.f32 %v421_v1  ;;  %v1830_v46 = vadd.f32 %v1718_v12, %v306_v32  ;;  %v184_v32 = vld [vmem:[%s1697_s7 + $0x128] sm:$0xff]  ;;  %v185_v38 = vld [vmem:[%s1697_s7 + $0x130] sm:$0xff] }
  0x58   : > { %v1218_v47 = vpop.eup %1217  ;;  %v792_v48 = vadd.f32 %v1706_v3, %v663_v39  ;;  %v665_v49 = vmul.f32 %v1216_v43, %v1713_v8  ;;  %1243 = vtanh.f32 %v422_v2  ;;  %v307_v50 = vmul.f32 %v1711_v7, %v178_v37 }
  0x59   : > { %v1220_v51 = vpop.eup %1219  ;;  %919 = vst [vmem:[%s1837_s22] sm:$0xff] %v791_v44  ;;  %v793_v52 = vadd.f32 %v1706_v3, %v664_v45  ;;  %v666_v53 = vmul.f32 %v1218_v47, %v1713_v8  ;;  %1245 = vtanh.f32 %v423_v4  ;;  %v308_v54 = vmul.f32 %v1711_v7, %v179_v42 }
  0x5a   : > { %v1222_v56 = vpop.eup %1221  ;;  %920 = vst [vmem:[%s1837_s22 + $0x8] sm:$0xff] %v792_v48  ;;  %v794_v57 = vadd.f32 %v1706_v3, %v665_v49  ;;  %v667_v58 = vmul.f32 %v1220_v51, %v1713_v8  ;;  %1247 = vtanh.f32 %v1777_v6  ;;  %v1849_v59 = vadd.f32 %v1718_v12, %v307_v50  ;;  %v186_v51 = vld [vmem:[%s1697_s7 + $0x138] sm:$0xff] }
  0x5b   : > { %v1224_v61 = vpop.eup %1223  ;;  %921 = vst [vmem:[%s1837_s22 + $0x10] sm:$0xff] %v793_v52  ;;  %v795_v62 = vadd.f32 %v1706_v3, %v666_v53  ;;  %v668_v63 = vmul.f32 %v1222_v56, %v1713_v8  ;;  %1249 = vtanh.f32 %v425_v17  ;;  %v1856_v0 = vadd.f32 %v1718_v12, %v308_v54 }
  0x5c   : > { %v1226_v1 = vpop.eup %1225  ;;  %922 = vst [vmem:[%s1837_s22 + $0x18] sm:$0xff] %v794_v57  ;;  %v796_v2 = vadd.f32 %v1706_v3, %v667_v58  ;;  %v669_v4 = vmul.f32 %v1224_v61, %v1713_v8  ;;  %1251 = vtanh.f32 %v1788_v18  ;;  %v309_v5 = vmul.f32 %v1711_v7, %v180_v55  ;;  %v183_v18 = vld [vmem:[%s1697_s7 + $0x120] sm:$0xff] }
  0x5d   : > { %v1228_v6 = vpop.eup %1227  ;;  %923 = vst [vmem:[%s1837_s22 + $0x20] sm:$0xff] %v795_v62  ;;  %v797_v9 = vadd.f32 %v1706_v3, %v668_v63  ;;  %v670_v10 = vmul.f32 %v1226_v1, %v1713_v8  ;;  %1253 = vtanh.f32 %v1795_v23  ;;  %v310_v11 = vmul.f32 %v1711_v7, %v181_v60  ;;  %v187_v55 = vld [vmem:[%s1697_s7 + $0x140] sm:$0xff] }
  0x5e   : > { %v1230_v14 = vpop.eup %1229  ;;  %924 = vst [vmem:[%s1837_s22 + $0x28] sm:$0xff] %v796_v2  ;;  %v798_v15 = vadd.f32 %v1706_v3, %v669_v4  ;;  %v671_v16 = vmul.f32 %v1228_v6, %v1713_v8  ;;  %1255 = vtanh.f32 %v1798_v24  ;;  %v1874_v17 = vadd.f32 %v1718_v12, %v309_v5  ;;  %v188_v4 = vld [vmem:[%s1697_s7 + $0x148] sm:$0xff] }
  0x5f   : > { %v1232_v19 = vpop.eup %1231  ;;  %925 = vst [vmem:[%s1837_s22 + $0x30] sm:$0xff] %v797_v9  ;;  %v799_v20 = vadd.f32 %v1706_v3, %v670_v10  ;;  %v672_v21 = vmul.f32 %v1230_v14, %v1713_v8  ;;  %1257 = vtanh.f32 %v1801_v25  ;;  %v1882_v22 = vadd.f32 %v1718_v12, %v310_v11  ;;  %v189_v11 = vld [vmem:[%s1697_s7 + $0x150] sm:$0xff] }
  0x60   : > { %v1234_v23 = vpop.eup %1233  ;;  %926 = vst [vmem:[%s1837_s22 + $0x38] sm:$0xff] %v798_v15  ;;  %v800_v24 = vadd.f32 %v1706_v3, %v671_v16  ;;  %v673_v27 = vmul.f32 %v1232_v19, %v1713_v8  ;;  %1259 = vtanh.f32 %v1804_v26  ;;  %v311_v28 = vmul.f32 %v1711_v7, %v182_v13 }
  0x61   : > { %v1236_v29 = vpop.eup %1235  ;;  %927 = vst [vmem:[%s1837_s22 + $0x40] sm:$0xff] %v799_v20  ;;  %v801_v25 = vadd.f32 %v1706_v3, %v672_v21  ;;  %v674_v30 = vmul.f32 %v1234_v23, %v1713_v8  ;;  %1261 = vtanh.f32 %v1813_v35  ;;  %v312_v31 = vmul.f32 %v1711_v7, %v183_v18 }
  0x62   : > { %v1238_v33 = vpop.eup %1237  ;;  %928 = vst [vmem:[%s1837_s22 + $0x48] sm:$0xff] %v800_v24  ;;  %v802_v34 = vadd.f32 %v1706_v3, %v673_v27  ;;  %v675_v26 = vmul.f32 %v1236_v29, %v1713_v8  ;;  %1263 = vtanh.f32 %v1816_v36  ;;  %v440_v37 = vadd.f32 %v1718_v12, %v311_v28  ;;  %v190_v27 = vld [vmem:[%s1697_s7 + $0x158] sm:$0xff] }
  0x63   : > { %v1240_v39 = vpop.eup %1239  ;;  %929 = vst [vmem:[%s1837_s22 + $0x50] sm:$0xff] %v801_v25  ;;  %v803_v35 = vadd.f32 %v1706_v3, %v674_v30  ;;  %v676_v42 = vmul.f32 %v1238_v33, %v1713_v8  ;;  %1265 = vtanh.f32 %v1821_v40  ;;  %v441_v43 = vadd.f32 %v1718_v12, %v312_v31  ;;  %v191_v31 = vld [vmem:[%s1697_s7 + $0x160] sm:$0xff] }
  0x64   : > { %v1242_v44 = vpop.eup %1241  ;;  %930 = vst [vmem:[%s1837_s22 + $0x58] sm:$0xff] %v802_v34  ;;  %v804_v36 = vadd.f32 %v1706_v3, %v675_v26  ;;  %v677_v45 = vmul.f32 %v1240_v39, %v1713_v8  ;;  %1267 = vtanh.f32 %v1824_v41  ;;  %v313_v47 = vmul.f32 %v1711_v7, %v184_v32 }
  0x65   : > { %v1244_v48 = vpop.eup %1243  ;;  %931 = vst [vmem:[%s1837_s22 + $0x60] sm:$0xff] %v803_v35  ;;  %v805_v49 = vadd.f32 %v1706_v3, %v676_v42  ;;  %v678_v40 = vmul.f32 %v1242_v44, %v1713_v8  ;;  %1269 = vtanh.f32 %v1830_v46  ;;  %v314_v50 = vmul.f32 %v1711_v7, %v185_v38 }
  0x66   : > { %v1246_v52 = vpop.eup %1245  ;;  %932 = vst [vmem:[%s1837_s22 + $0x68] sm:$0xff] %v804_v36  ;;  %v806_v53 = vadd.f32 %v1706_v3, %v677_v45  ;;  %v679_v41 = vmul.f32 %v1244_v48, %v1713_v8  ;;  %1271 = vtanh.f32 %v1849_v59  ;;  %v442_v54 = vadd.f32 %v1718_v12, %v313_v47 }
  0x67   : > { %v1248_v56 = vpop.eup %1247  ;;  %933 = vst [vmem:[%s1837_s22 + $0x70] sm:$0xff] %v805_v49  ;;  %v807_v46 = vadd.f32 %v1706_v3, %v678_v40  ;;  %v680_v57 = vmul.f32 %v1246_v52, %v1713_v8  ;;  %1273 = vtanh.f32 %v1856_v0  ;;  %v443_v58 = vadd.f32 %v1718_v12, %v314_v50 }
  0x68   : > { %v1250_v60 = vpop.eup %1249  ;;  %934 = vst [vmem:[%s1837_s22 + $0x78] sm:$0xff] %v806_v53  ;;  %v808_v59 = vadd.f32 %v1706_v3, %v679_v41  ;;  %v681_v61 = vmul.f32 %v1248_v56, %v1713_v8  ;;  %1275 = vtanh.f32 %v1874_v17  ;;  %v315_v62 = vmul.f32 %v1711_v7, %v186_v51  ;;  %v194_v56 = vld [vmem:[%s1697_s7 + $0x178] sm:$0xff] }
  0x69   : > { %v1252_v63 = vpop.eup %1251  ;;  %935 = vst [vmem:[%s1837_s22 + $0x80] sm:$0xff] %v807_v46  ;;  %v809_v1 = vadd.f32 %v1706_v3, %v680_v57  ;;  %v682_v0 = vmul.f32 %v1250_v60, %v1713_v8  ;;  %1277 = vtanh.f32 %v1882_v22  ;;  %v316_v2 = vmul.f32 %v1711_v7, %v187_v55 }
  0x6a   : > { %v1254_v5 = vpop.eup %1253  ;;  %936 = vst [vmem:[%s1837_s22 + $0x88] sm:$0xff] %v808_v59  ;;  %v810_v6 = vadd.f32 %v1706_v3, %v681_v61  ;;  %v683_v9 = vmul.f32 %v1252_v63, %v1713_v8  ;;  %1279 = vtanh.f32 %v440_v37  ;;  %v444_v10 = vadd.f32 %v1718_v12, %v315_v62  ;;  %v192_v37 = vld [vmem:[%s1697_s7 + $0x168] sm:$0xff]  ;;  %v195_v59 = vld [vmem:[%s1697_s7 + $0x180] sm:$0xff] }
  0x6b   : > { %v1256_v13 = vpop.eup %1255  ;;  %937 = vst [vmem:[%s1837_s22 + $0x90] sm:$0xff] %v809_v1  ;;  %v811_v14 = vadd.f32 %v1706_v3, %v682_v0  ;;  %v684_v15 = vmul.f32 %v1254_v5, %v1713_v8  ;;  %1281 = vtanh.f32 %v441_v43  ;;  %v445_v16 = vadd.f32 %v1718_v12, %v316_v2  ;;  %v193_v43 = vld [vmem:[%s1697_s7 + $0x170] sm:$0xff]  ;;  %v196_v0 = vld [vmem:[%s1697_s7 + $0x188] sm:$0xff] }
  0x6c   : > { %v1258_v17 = vpop.eup %1257  ;;  %938 = vst [vmem:[%s1837_s22 + $0x98] sm:$0xff] %v810_v6  ;;  %v812_v18 = vadd.f32 %v1706_v3, %v683_v9  ;;  %v685_v19 = vmul.f32 %v1256_v13, %v1713_v8  ;;  %1283 = vtanh.f32 %v442_v54  ;;  %v317_v20 = vmul.f32 %v1711_v7, %v188_v4  ;;  %v197_v9 = vld [vmem:[%s1697_s7 + $0x190] sm:$0xff] }
  0x6d   : > { %v1260_v21 = vpop.eup %1259  ;;  %939 = vst [vmem:[%s1837_s22 + $0xa0] sm:$0xff] %v811_v14  ;;  %v813_v22 = vadd.f32 %v1706_v3, %v684_v15  ;;  %v686_v23 = vmul.f32 %v1258_v17, %v1713_v8  ;;  %1285 = vtanh.f32 %v443_v58  ;;  %v318_v24 = vmul.f32 %v1711_v7, %v189_v11 }
  0x6e   : > { %v1262_v28 = vpop.eup %1261  ;;  %940 = vst [vmem:[%s1837_s22 + $0xa8] sm:$0xff] %v812_v18  ;;  %v814_v29 = vadd.f32 %v1706_v3, %v685_v19  ;;  %v687_v25 = vmul.f32 %v1260_v21, %v1713_v8  ;;  %1287 = vtanh.f32 %v444_v10  ;;  %v446_v30 = vadd.f32 %v1718_v12, %v317_v20 }
  0x6f   : > { %v1264_v32 = vpop.eup %1263  ;;  %941 = vst [vmem:[%s1837_s22 + $0xb0] sm:$0xff] %v813_v22  ;;  %v815_v33 = vadd.f32 %v1706_v3, %v686_v23  ;;  %v688_v34 = vmul.f32 %v1262_v28, %v1713_v8  ;;  %1289 = vtanh.f32 %v445_v16  ;;  %v447_v26 = vadd.f32 %v1718_v12, %v318_v24 }
  0x70   : > { %v1266_v38 = vpop.eup %1265  ;;  %942 = vst [vmem:[%s1837_s22 + $0xb8] sm:$0xff] %v814_v29  ;;  %v816_v39 = vadd.f32 %v1706_v3, %v687_v25  ;;  %v689_v35 = vmul.f32 %v1264_v32, %v1713_v8  ;;  %1291 = vtanh.f32 %v446_v30  ;;  %v319_v42 = vmul.f32 %v1711_v7, %v190_v27  ;;  %v198_v27 = vld [vmem:[%s1697_s7 + $0x198] sm:$0xff] }
  0x71   : > { %v1268_v44 = vpop.eup %1267  ;;  %943 = vst [vmem:[%s1837_s22 + $0xc0] sm:$0xff] %v815_v33  ;;  %v817_v36 = vadd.f32 %v1706_v3, %v688_v34  ;;  %v690_v45 = vmul.f32 %v1266_v38, %v1713_v8  ;;  %1293 = vtanh.f32 %v447_v26  ;;  %v320_v47 = vmul.f32 %v1711_v7, %v191_v31  ;;  %v199_v31 = vld [vmem:[%s1697_s7 + $0x1a0] sm:$0xff] }
  0x72   : > { %v1270_v48 = vpop.eup %1269  ;;  %944 = vst [vmem:[%s1837_s22 + $0xc8] sm:$0xff] %v816_v39  ;;  %v818_v49 = vadd.f32 %v1706_v3, %v689_v35  ;;  %v691_v40 = vmul.f32 %v1268_v44, %v1713_v8  ;;  %v448_v50 = vadd.f32 %v1718_v12, %v319_v42  ;;  %v321_v51 = vmul.f32 %v1711_v7, %v192_v37  ;;  %v200_v37 = vld [vmem:[%s1697_s7 + $0x1a8] sm:$0xff] }
  0x73   : > { %v1272_v52 = vpop.eup %1271  ;;  %945 = vst [vmem:[%s1837_s22 + $0xd0] sm:$0xff] %v817_v36  ;;  %v819_v53 = vadd.f32 %v1706_v3, %v690_v45  ;;  %v692_v41 = vmul.f32 %v1270_v48, %v1713_v8  ;;  %v449_v54 = vadd.f32 %v1718_v12, %v320_v47  ;;  %v322_v55 = vmul.f32 %v1711_v7, %v193_v43  ;;  %v201_v43 = vld [vmem:[%s1697_s7 + $0x1b0] sm:$0xff]  ;;  %v202_v48 = vld [vmem:[%s1697_s7 + $0x1b8] sm:$0xff] }
  0x74   : > { %v1274_v46 = vpop.eup %1273  ;;  %946 = vst [vmem:[%s1837_s22 + $0xd8] sm:$0xff] %v818_v49  ;;  %v820_v57 = vadd.f32 %v1706_v3, %v691_v40  ;;  %v693_v58 = vmul.f32 %v1272_v52, %v1713_v8  ;;  %1295 = vtanh.f32 %v448_v50  ;;  %v450_v60 = vadd.f32 %v1718_v12, %v321_v51 }
  0x75   : > { %v1276_v61 = vpop.eup %1275  ;;  %947 = vst [vmem:[%s1837_s22 + $0xe0] sm:$0xff] %v819_v53  ;;  %v821_v62 = vadd.f32 %v1706_v3, %v692_v41  ;;  %v694_v63 = vmul.f32 %v1274_v46, %v1713_v8  ;;  %1297 = vtanh.f32 %v449_v54  ;;  %v451_v1 = vadd.f32 %v1718_v12, %v322_v55  ;;  %v203_v53 = vld [vmem:[%s1697_s7 + $0x1c0] sm:$0xff]  ;;  %v204_v46 = vld [vmem:[%s1697_s7 + $0x1c8] sm:$0xff] }
  0x76   : > { %v1278_v2 = vpop.eup %1277  ;;  %948 = vst [vmem:[%s1837_s22 + $0xe8] sm:$0xff] %v820_v57  ;;  %v822_v4 = vadd.f32 %v1706_v3, %v693_v58  ;;  %v695_v5 = vmul.f32 %v1276_v61, %v1713_v8  ;;  %1299 = vtanh.f32 %v450_v60  ;;  %v323_v6 = vmul.f32 %v1711_v7, %v194_v56 }
  0x77   : > { %v1280_v10 = vpop.eup %1279  ;;  %949 = vst [vmem:[%s1837_s22 + $0xf0] sm:$0xff] %v821_v62  ;;  %v823_v11 = vadd.f32 %v1706_v3, %v694_v63  ;;  %v696_v13 = vmul.f32 %v1278_v2, %v1713_v8  ;;  %1301 = vtanh.f32 %v451_v1  ;;  %v324_v14 = vmul.f32 %v1711_v7, %v195_v59  ;;  %v205_v59 = vld [vmem:[%s1697_s7 + $0x1d0] sm:$0xff] }
  0x78   : > { %v1282_v15 = vpop.eup %1281  ;;  %950 = vst [vmem:[%s1837_s22 + $0xf8] sm:$0xff] %v822_v4  ;;  %v824_v16 = vadd.f32 %v1706_v3, %v695_v5  ;;  %v697_v17 = vmul.f32 %v1280_v10, %v1713_v8  ;;  %v452_v18 = vadd.f32 %v1718_v12, %v323_v6  ;;  %v325_v19 = vmul.f32 %v1711_v7, %v196_v0 }
  0x79   : > { %v1284_v20 = vpop.eup %1283  ;;  %951 = vst [vmem:[%s1837_s22 + $0x100] sm:$0xff] %v823_v11  ;;  %v825_v21 = vadd.f32 %v1706_v3, %v696_v13  ;;  %v698_v22 = vmul.f32 %v1282_v15, %v1713_v8  ;;  %v453_v23 = vadd.f32 %v1718_v12, %v324_v14  ;;  %v326_v24 = vmul.f32 %v1711_v7, %v197_v9  ;;  %v206_v13 = vld [vmem:[%s1697_s7 + $0x1d8] sm:$0xff]  ;;  %v207_v14 = vld [vmem:[%s1697_s7 + $0x1e0] sm:$0xff] }
  0x7a   : > { %v1286_v28 = vpop.eup %1285  ;;  %952 = vst [vmem:[%s1837_s22 + $0x108] sm:$0xff] %v824_v16  ;;  %v826_v29 = vadd.f32 %v1706_v3, %v697_v17  ;;  %v699_v25 = vmul.f32 %v1284_v20, %v1713_v8  ;;  %1303 = vtanh.f32 %v452_v18  ;;  %v454_v30 = vadd.f32 %v1718_v12, %v325_v19  ;;  %v208_v19 = vld [vmem:[%s1697_s7 + $0x1e8] sm:$0xff]  ;;  %v209_v20 = vld [vmem:[%s1697_s7 + $0x1f0] sm:$0xff] }
  0x7b   : > { %v1288_v32 = vpop.eup %1287  ;;  %953 = vst [vmem:[%s1837_s22 + $0x110] sm:$0xff] %v825_v21  ;;  %v827_v33 = vadd.f32 %v1706_v3, %v698_v22  ;;  %v700_v34 = vmul.f32 %v1286_v28, %v1713_v8  ;;  %1305 = vtanh.f32 %v453_v23  ;;  %v455_v26 = vadd.f32 %v1718_v12, %v326_v24  ;;  %v210_v24 = vld [vmem:[%s1697_s7 + $0x1f8] sm:$0xff] }
  0x7c   : > { %v1290_v38 = vpop.eup %1289  ;;  %954 = vst [vmem:[%s1837_s22 + $0x118] sm:$0xff] %v826_v29  ;;  %v828_v39 = vadd.f32 %v1706_v3, %v699_v25  ;;  %v701_v35 = vmul.f32 %v1288_v32, %v1713_v8  ;;  %1307 = vtanh.f32 %v454_v30  ;;  %v327_v42 = vmul.f32 %v1711_v7, %v198_v27  ;;  %v211_v25 = vld [vmem:[%s1697_s7 + $0x200] sm:$0xff] }
  0x7d   : > { %v1292_v44 = vpop.eup %1291  ;;  %955 = vst [vmem:[%s1837_s22 + $0x120] sm:$0xff] %v827_v33  ;;  %v829_v36 = vadd.f32 %v1706_v3, %v700_v34  ;;  %v702_v45 = vmul.f32 %v1290_v38, %v1713_v8  ;;  %1309 = vtanh.f32 %v455_v26  ;;  %v328_v47 = vmul.f32 %v1711_v7, %v199_v31 }
  0x7e   : > { %v1294_v49 = vpop.eup %1293  ;;  %956 = vst [vmem:[%s1837_s22 + $0x128] sm:$0xff] %v828_v39  ;;  %v830_v40 = vadd.f32 %v1706_v3, %v701_v35  ;;  %v703_v50 = vmul.f32 %v1292_v44, %v1713_v8  ;;  %v456_v51 = vadd.f32 %v1718_v12, %v327_v42  ;;  %v329_v52 = vmul.f32 %v1711_v7, %v200_v37 }
  0x7f   : > { %957 = vst [vmem:[%s1837_s22 + $0x130] sm:$0xff] %v829_v36  ;;  %v831_v41 = vadd.f32 %v1706_v3, %v702_v45  ;;  %v704_v54 = vmul.f32 %v1294_v49, %v1713_v8  ;;  %v457_v55 = vadd.f32 %v1718_v12, %v328_v47  ;;  %v330_v56 = vmul.f32 %v1711_v7, %v201_v43  ;;  %v212_v45 = vld [vmem:[%s1697_s7 + $0x208] sm:$0xff]  ;;  %v213_v47 = vld [vmem:[%s1697_s7 + $0x210] sm:$0xff] }
  0x80   : > { %958 = vst [vmem:[%s1837_s22 + $0x138] sm:$0xff] %v830_v40  ;;  %v832_v57 = vadd.f32 %v1706_v3, %v703_v50  ;;  %1311 = vtanh.f32 %v456_v51  ;;  %v458_v58 = vadd.f32 %v1718_v12, %v329_v52  ;;  %v331_v60 = vmul.f32 %v1711_v7, %v202_v48  ;;  %v214_v51 = vld [vmem:[%s1697_s7 + $0x218] sm:$0xff]  ;;  %v215_v52 = vld [vmem:[%s1697_s7 + $0x220] sm:$0xff] }
  0x81   : > { %v1296_v61 = vpop.eup %1295  ;;  %959 = vst [vmem:[%s1837_s22 + $0x140] sm:$0xff] %v831_v41  ;;  %v833_v62 = vadd.f32 %v1706_v3, %v704_v54  ;;  %1313 = vtanh.f32 %v457_v55  ;;  %v459_v63 = vadd.f32 %v1718_v12, %v330_v56  ;;  %v332_v1 = vmul.f32 %v1711_v7, %v203_v53 }
  0x82   : > { %v1298_v0 = vpop.eup %1297  ;;  %960 = vst [vmem:[%s1837_s22 + $0x148] sm:$0xff] %v832_v57  ;;  %v705_v2 = vmul.f32 %v1296_v61, %v1713_v8  ;;  %1315 = vtanh.f32 %v458_v58  ;;  %v460_v4 = vadd.f32 %v1718_v12, %v331_v60  ;;  %v333_v5 = vmul.f32 %v1711_v7, %v204_v46  ;;  %v216_v61 = vld [vmem:[%s1697_s7 + $0x228] sm:$0xff] }
  0x83   : > { %v1300_v6 = vpop.eup %1299  ;;  %961 = vst [vmem:[%s1837_s22 + $0x150] sm:$0xff] %v833_v62  ;;  %v706_v9 = vmul.f32 %v1298_v0, %v1713_v8  ;;  %1317 = vtanh.f32 %v459_v63  ;;  %v461_v10 = vadd.f32 %v1718_v12, %v332_v1  ;;  %v334_v11 = vmul.f32 %v1711_v7, %v205_v59 }
  0x84   : > { %v1302_v15 = vpop.eup %1301  ;;  %v834_v16 = vadd.f32 %v1706_v3, %v705_v2  ;;  %v707_v17 = vmul.f32 %v1300_v6, %v1713_v8  ;;  %1319 = vtanh.f32 %v460_v4  ;;  %v462_v18 = vadd.f32 %v1718_v12, %v333_v5  ;;  %v217_v2 = vld [vmem:[%s1697_s7 + $0x230] sm:$0xff] }
  0x85   : > { %v835_v21 = vadd.f32 %v1706_v3, %v706_v9  ;;  %v708_v22 = vmul.f32 %v1302_v15, %v1713_v8  ;;  %1321 = vtanh.f32 %v461_v10  ;;  %v463_v23 = vadd.f32 %v1718_v12, %v334_v11 }
  0x86   : > { %962 = vst [vmem:[%s1837_s22 + $0x158] sm:$0xff] %v834_v16  ;;  %v836_v27 = vadd.f32 %v1706_v3, %v707_v17  ;;  %1323 = vtanh.f32 %v462_v18  ;;  %v335_v28 = vmul.f32 %v1711_v7, %v206_v13  ;;  %v336_v29 = vmul.f32 %v1711_v7, %v207_v14 }
  0x87   : > { %v1304_v30 = vpop.eup %1303  ;;  %963 = vst [vmem:[%s1837_s22 + $0x160] sm:$0xff] %v835_v21  ;;  %v837_v31 = vadd.f32 %v1706_v3, %v708_v22  ;;  %1325 = vtanh.f32 %v463_v23  ;;  %v337_v32 = vmul.f32 %v1711_v7, %v208_v19  ;;  %v338_v33 = vmul.f32 %v1711_v7, %v209_v20  ;;  %v218_v19 = vld [vmem:[%s1697_s7 + $0x238] sm:$0xff] }
  0x88   : > { %v1306_v34 = vpop.eup %1305  ;;  %964 = vst [vmem:[%s1837_s22 + $0x168] sm:$0xff] %v836_v27  ;;  %v709_v26 = vmul.f32 %v1304_v30, %v1713_v8  ;;  %v464_v37 = vadd.f32 %v1718_v12, %v335_v28  ;;  %v465_v38 = vadd.f32 %v1718_v12, %v336_v29  ;;  %v339_v39 = vmul.f32 %v1711_v7, %v210_v24  ;;  %v219_v24 = vld [vmem:[%s1697_s7 + $0x240] sm:$0xff]  ;;  %v220_v30 = vld [vmem:[%s1697_s7 + $0x248] sm:$0xff] }
  0x89   : > { %v1308_v35 = vpop.eup %1307  ;;  %965 = vst [vmem:[%s1837_s22 + $0x170] sm:$0xff] %v837_v31  ;;  %v710_v42 = vmul.f32 %v1306_v34, %v1713_v8  ;;  %v466_v43 = vadd.f32 %v1718_v12, %v337_v32  ;;  %v467_v44 = vadd.f32 %v1718_v12, %v338_v33  ;;  %v340_v36 = vmul.f32 %v1711_v7, %v211_v25  ;;  %v221_v31 = vld [vmem:[%s1697_s7 + $0x250] sm:$0xff] }
  0x8a   : > { %v1310_v48 = vpop.eup %1309  ;;  %v838_v49 = vadd.f32 %v1706_v3, %v709_v26  ;;  %v711_v40 = vmul.f32 %v1308_v35, %v1713_v8  ;;  %1327 = vtanh.f32 %v464_v37  ;;  %v468_v50 = vadd.f32 %v1718_v12, %v339_v39  ;;  %v222_v37 = vld [vmem:[%s1697_s7 + $0x258] sm:$0xff] }
  0x8b   : > { %v839_v53 = vadd.f32 %v1706_v3, %v710_v42  ;;  %v712_v41 = vmul.f32 %v1310_v48, %v1713_v8  ;;  %1329 = vtanh.f32 %v465_v38  ;;  %v469_v54 = vadd.f32 %v1718_v12, %v340_v36  ;;  %v223_v38 = vld [vmem:[%s1697_s7 + $0x260] sm:$0xff] }
  0x8c   : > { %966 = vst [vmem:[%s1837_s22 + $0x178] sm:$0xff] %v838_v49  ;;  %v840_v55 = vadd.f32 %v1706_v3, %v711_v40  ;;  %1331 = vtanh.f32 %v466_v43  ;;  %v341_v56 = vmul.f32 %v1711_v7, %v212_v45  ;;  %v342_v46 = vmul.f32 %v1711_v7, %v213_v47 }
  0x8d   : > { %v1312_v57 = vpop.eup %1311  ;;  %967 = vst [vmem:[%s1837_s22 + $0x180] sm:$0xff] %v839_v53  ;;  %v841_v58 = vadd.f32 %v1706_v3, %v712_v41  ;;  %1333 = vtanh.f32 %v467_v44  ;;  %v343_v60 = vmul.f32 %v1711_v7, %v214_v51  ;;  %v344_v59 = vmul.f32 %v1711_v7, %v215_v52  ;;  %v224_v51 = vld [vmem:[%s1697_s7 + $0x268] sm:$0xff] }
  0x8e   : > { %v1314_v62 = vpop.eup %1313  ;;  %968 = vst [vmem:[%s1837_s22 + $0x188] sm:$0xff] %v840_v55  ;;  %v713_v63 = vmul.f32 %v1312_v57, %v1713_v8  ;;  %1335 = vtanh.f32 %v468_v50  ;;  %v470_v1 = vadd.f32 %v1718_v12, %v341_v56  ;;  %v471_v0 = vadd.f32 %v1718_v12, %v342_v46  ;;  %v225_v55 = vld [vmem:[%s1697_s7 + $0x270] sm:$0xff] }
  0x8f   : > { %v1316_v4 = vpop.eup %1315  ;;  %969 = vst [vmem:[%s1837_s22 + $0x190] sm:$0xff] %v841_v58  ;;  %v714_v5 = vmul.f32 %v1314_v62, %v1713_v8  ;;  %1337 = vtanh.f32 %v469_v54  ;;  %v472_v6 = vadd.f32 %v1718_v12, %v343_v60  ;;  %v473_v9 = vadd.f32 %v1718_v12, %v344_v59 }
  0x90   : > { %v1318_v10 = vpop.eup %1317  ;;  %v842_v11 = vadd.f32 %v1706_v3, %v713_v63  ;;  %v715_v13 = vmul.f32 %v1316_v4, %v1713_v8  ;;  %1339 = vtanh.f32 %v470_v1  ;;  %v345_v14 = vmul.f32 %v1711_v7, %v216_v61  ;;  %v226_v4 = vld [vmem:[%s1697_s7 + $0x278] sm:$0xff] }
  0x91   : > { %v1320_v15 = vpop.eup %1319  ;;  %v843_v16 = vadd.f32 %v1706_v3, %v714_v5  ;;  %v716_v17 = vmul.f32 %v1318_v10, %v1713_v8  ;;  %1341 = vtanh.f32 %v471_v0  ;;  %v346_v18 = vmul.f32 %v1711_v7, %v217_v2 }
  0x92   : > { %v1322_v20 = vpop.eup %1321  ;;  %970 = vst [vmem:[%s1837_s22 + $0x198] sm:$0xff] %v842_v11  ;;  %v844_v21 = vadd.f32 %v1706_v3, %v715_v13  ;;  %v717_v22 = vmul.f32 %v1320_v15, %v1713_v8  ;;  %1343 = vtanh.f32 %v472_v6  ;;  %v474_v23 = vadd.f32 %v1718_v12, %v345_v14  ;;  %v227_v11 = vld [vmem:[%s1697_s7 + $0x280] sm:$0xff] }
  0x93   : > { %v1324_v27 = vpop.eup %1323  ;;  %971 = vst [vmem:[%s1837_s22 + $0x1a0] sm:$0xff] %v843_v16  ;;  %v845_v28 = vadd.f32 %v1706_v3, %v716_v17  ;;  %v718_v29 = vmul.f32 %v1322_v20, %v1713_v8  ;;  %1345 = vtanh.f32 %v473_v9  ;;  %v475_v25 = vadd.f32 %v1718_v12, %v346_v18  ;;  %v228_v17 = vld [vmem:[%s1697_s7 + $0x288] sm:$0xff] }
  0x94   : > { %v1326_v32 = vpop.eup %1325  ;;  %972 = vst [vmem:[%s1837_s22 + $0x1a8] sm:$0xff] %v844_v21  ;;  %v846_v33 = vadd.f32 %v1706_v3, %v717_v22  ;;  %v719_v34 = vmul.f32 %v1324_v27, %v1713_v8  ;;  %1347 = vtanh.f32 %v474_v23  ;;  %v347_v26 = vmul.f32 %v1711_v7, %v218_v19  ;;  %v229_v22 = vld [vmem:[%s1697_s7 + $0x290] sm:$0xff] }
  0x95   : > { %973 = vst [vmem:[%s1837_s22 + $0x1b0] sm:$0xff] %v845_v28  ;;  %v847_v39 = vadd.f32 %v1706_v3, %v718_v29  ;;  %v720_v35 = vmul.f32 %v1326_v32, %v1713_v8  ;;  %1349 = vtanh.f32 %v475_v25  ;;  %v348_v42 = vmul.f32 %v1711_v7, %v219_v24 }
  0x96   : > { %974 = vst [vmem:[%s1837_s22 + $0x1b8] sm:$0xff] %v846_v33  ;;  %v848_v43 = vadd.f32 %v1706_v3, %v719_v34  ;;  %v476_v44 = vadd.f32 %v1718_v12, %v347_v26  ;;  %v349_v36 = vmul.f32 %v1711_v7, %v220_v30  ;;  %v350_v45 = vmul.f32 %v1711_v7, %v221_v31 }
  0x97   : > { %v1328_v47 = vpop.eup %1327  ;;  %975 = vst [vmem:[%s1837_s22 + $0x1c0] sm:$0xff] %v847_v39  ;;  %v849_v48 = vadd.f32 %v1706_v3, %v720_v35  ;;  %v477_v49 = vadd.f32 %v1718_v12, %v348_v42  ;;  %v351_v40 = vmul.f32 %v1711_v7, %v222_v37  ;;  %v352_v50 = vmul.f32 %v1711_v7, %v223_v38  ;;  %v230_v39 = vld [vmem:[%s1697_s7 + $0x298] sm:$0xff]  ;;  %v231_v35 = vld [vmem:[%s1697_s7 + $0x2a0] sm:$0xff] }
  0x98   : > { %v1330_v52 = vpop.eup %1329  ;;  %976 = vst [vmem:[%s1837_s22 + $0x1c8] sm:$0xff] %v848_v43  ;;  %v721_v53 = vmul.f32 %v1328_v47, %v1713_v8  ;;  %1351 = vtanh.f32 %v476_v44  ;;  %v478_v41 = vadd.f32 %v1718_v12, %v349_v36  ;;  %v479_v54 = vadd.f32 %v1718_v12, %v350_v45  ;;  %v232_v45 = vld [vmem:[%s1697_s7 + $0x2a8] sm:$0xff]  ;;  %v233_v47 = vld [vmem:[%s1697_s7 + $0x2b0] sm:$0xff] }
  0x99   : > { %v1332_v56 = vpop.eup %1331  ;;  %977 = vst [vmem:[%s1837_s22 + $0x1d0] sm:$0xff] %v849_v48  ;;  %v722_v46 = vmul.f32 %v1330_v52, %v1713_v8  ;;  %1353 = vtanh.f32 %v477_v49  ;;  %v480_v57 = vadd.f32 %v1718_v12, %v351_v40  ;;  %v481_v58 = vadd.f32 %v1718_v12, %v352_v50  ;;  %v234_v50 = vld [vmem:[%s1697_s7 + $0x2b8] sm:$0xff] }
  0x9a   : > { %v1334_v60 = vpop.eup %1333  ;;  %v850_v59 = vadd.f32 %v1706_v3, %v721_v53  ;;  %v723_v61 = vmul.f32 %v1332_v56, %v1713_v8  ;;  %1355 = vtanh.f32 %v478_v41  ;;  %v353_v62 = vmul.f32 %v1711_v7, %v224_v51  ;;  %v235_v41 = vld [vmem:[%s1697_s7 + $0x2c0] sm:$0xff] }
  0x9b   : > { %v1336_v63 = vpop.eup %1335  ;;  %v851_v1 = vadd.f32 %v1706_v3, %v722_v46  ;;  %v724_v0 = vmul.f32 %v1334_v60, %v1713_v8  ;;  %1357 = vtanh.f32 %v479_v54  ;;  %v354_v2 = vmul.f32 %v1711_v7, %v225_v55 }
  0x9c   : > { %v1338_v5 = vpop.eup %1337  ;;  %978 = vst [vmem:[%s1837_s22 + $0x1d8] sm:$0xff] %v850_v59  ;;  %v852_v6 = vadd.f32 %v1706_v3, %v723_v61  ;;  %v725_v9 = vmul.f32 %v1336_v63, %v1713_v8  ;;  %1359 = vtanh.f32 %v480_v57  ;;  %v482_v10 = vadd.f32 %v1718_v12, %v353_v62 }
  0x9d   : > { %v1340_v13 = vpop.eup %1339  ;;  %979 = vst [vmem:[%s1837_s22 + $0x1e0] sm:$0xff] %v851_v1  ;;  %v853_v14 = vadd.f32 %v1706_v3, %v724_v0  ;;  %v726_v15 = vmul.f32 %v1338_v5, %v1713_v8  ;;  %1361 = vtanh.f32 %v481_v58  ;;  %v483_v16 = vadd.f32 %v1718_v12, %v354_v2 }
  0x9e   : > { %v1342_v18 = vpop.eup %1341  ;;  %980 = vst [vmem:[%s1837_s22 + $0x1e8] sm:$0xff] %v852_v6  ;;  %v854_v19 = vadd.f32 %v1706_v3, %v725_v9  ;;  %v727_v20 = vmul.f32 %v1340_v13, %v1713_v8  ;;  %1363 = vtanh.f32 %v482_v10  ;;  %v355_v21 = vmul.f32 %v1711_v7, %v226_v4  ;;  %v236_v4 = vld [vmem:[%s1697_s7 + $0x2c8] sm:$0xff] }
  0x9f   : > { %v1344_v23 = vpop.eup %1343  ;;  %981 = vst [vmem:[%s1837_s22 + $0x1f0] sm:$0xff] %v853_v14  ;;  %v855_v24 = vadd.f32 %v1706_v3, %v726_v15  ;;  %v728_v27 = vmul.f32 %v1342_v18, %v1713_v8  ;;  %1365 = vtanh.f32 %v483_v16  ;;  %v356_v28 = vmul.f32 %v1711_v7, %v227_v11  ;;  %v237_v11 = vld [vmem:[%s1697_s7 + $0x2d0] sm:$0xff] }
  0xa0   : > { %v1346_v29 = vpop.eup %1345  ;;  %982 = vst [vmem:[%s1837_s22 + $0x1f8] sm:$0xff] %v854_v19  ;;  %v856_v25 = vadd.f32 %v1706_v3, %v727_v20  ;;  %v729_v30 = vmul.f32 %v1344_v23, %v1713_v8  ;;  %v484_v31 = vadd.f32 %v1718_v12, %v355_v21  ;;  %v357_v32 = vmul.f32 %v1711_v7, %v228_v17 }
  0xa1   : > { %v1348_v33 = vpop.eup %1347  ;;  %983 = vst [vmem:[%s1837_s22 + $0x200] sm:$0xff] %v855_v24  ;;  %v857_v34 = vadd.f32 %v1706_v3, %v728_v27  ;;  %v730_v26 = vmul.f32 %v1346_v29, %v1713_v8  ;;  %v485_v37 = vadd.f32 %v1718_v12, %v356_v28  ;;  %v358_v38 = vmul.f32 %v1711_v7, %v229_v22  ;;  %v238_v27 = vld [vmem:[%s1697_s7 + $0x2d8] sm:$0xff]  ;;  %v239_v28 = vld [vmem:[%s1697_s7 + $0x2e0] sm:$0xff] }
  0xa2   : > { %v1350_v42 = vpop.eup %1349  ;;  %984 = vst [vmem:[%s1837_s22 + $0x208] sm:$0xff] %v856_v25  ;;  %v858_v43 = vadd.f32 %v1706_v3, %v729_v30  ;;  %v731_v44 = vmul.f32 %v1348_v33, %v1713_v8  ;;  %1367 = vtanh.f32 %v484_v31  ;;  %v486_v36 = vadd.f32 %v1718_v12, %v357_v32  ;;  %v240_v32 = vld [vmem:[%s1697_s7 + $0x2e8] sm:$0xff]  ;;  %v241_v33 = vld [vmem:[%s1697_s7 + $0x2f0] sm:$0xff] }
  0xa3   : > { %985 = vst [vmem:[%s1837_s22 + $0x210] sm:$0xff] %v857_v34  ;;  %v859_v48 = vadd.f32 %v1706_v3, %v730_v26  ;;  %v732_v49 = vmul.f32 %v1350_v42, %v1713_v8  ;;  %1369 = vtanh.f32 %v485_v37  ;;  %v487_v40 = vadd.f32 %v1718_v12, %v358_v38  ;;  %v242_v38 = vld [vmem:[%s1697_s7 + $0x2f8] sm:$0xff] }
  0xa4   : > { %986 = vst [vmem:[%s1837_s22 + $0x218] sm:$0xff] %v858_v43  ;;  %v860_v51 = vadd.f32 %v1706_v3, %v731_v44  ;;  %1371 = vtanh.f32 %v486_v36  ;;  %v359_v52 = vmul.f32 %v1711_v7, %v230_v39  ;;  %v360_v53 = vmul.f32 %v1711_v7, %v231_v35  ;;  %v243_v43 = vld [vmem:[%s1697_s7 + $0x300] sm:$0xff] }
  0xa5   : > { %v1352_v54 = vpop.eup %1351  ;;  %987 = vst [vmem:[%s1837_s22 + $0x220] sm:$0xff] %v859_v48  ;;  %v861_v55 = vadd.f32 %v1706_v3, %v732_v49  ;;  %1373 = vtanh.f32 %v487_v40  ;;  %v361_v56 = vmul.f32 %v1711_v7, %v232_v45  ;;  %v362_v46 = vmul.f32 %v1711_v7, %v233_v47 }
  0xa6   : > { %v1354_v57 = vpop.eup %1353  ;;  %988 = vst [vmem:[%s1837_s22 + $0x228] sm:$0xff] %v860_v51  ;;  %v733_v58 = vmul.f32 %v1352_v54, %v1713_v8  ;;  %v488_v60 = vadd.f32 %v1718_v12, %v359_v52  ;;  %v489_v59 = vadd.f32 %v1718_v12, %v360_v53  ;;  %v363_v61 = vmul.f32 %v1711_v7, %v234_v50 }
  0xa7   : > { %v1356_v62 = vpop.eup %1355  ;;  %989 = vst [vmem:[%s1837_s22 + $0x230] sm:$0xff] %v861_v55  ;;  %v734_v63 = vmul.f32 %v1354_v57, %v1713_v8  ;;  %v490_v1 = vadd.f32 %v1718_v12, %v361_v56  ;;  %v491_v0 = vadd.f32 %v1718_v12, %v362_v46  ;;  %v364_v2 = vmul.f32 %v1711_v7, %v235_v41  ;;  %v244_v56 = vld [vmem:[%s1697_s7 + $0x308] sm:$0xff]  ;;  %v245_v46 = vld [vmem:[%s1697_s7 + $0x310] sm:$0xff] }
  0xa8   : > { %v1358_v5 = vpop.eup %1357  ;;  %v862_v6 = vadd.f32 %v1706_v3, %v733_v58  ;;  %v735_v9 = vmul.f32 %v1356_v62, %v1713_v8  ;;  %1375 = vtanh.f32 %v488_v60  ;;  %v492_v10 = vadd.f32 %v1718_v12, %v363_v61  ;;  %v246_v61 = vld [vmem:[%s1697_s7 + $0x318] sm:$0xff]  ;;  %v247_v62 = vld [vmem:[%s1697_s7 + $0x320] sm:$0xff] }
  0xa9   : > { %v1360_v13 = vpop.eup %1359  ;;  %v863_v14 = vadd.f32 %v1706_v3, %v734_v63  ;;  %v736_v15 = vmul.f32 %v1358_v5, %v1713_v8  ;;  %1377 = vtanh.f32 %v489_v59  ;;  %v493_v16 = vadd.f32 %v1718_v12, %v364_v2 }
  0xaa   : > { %v1362_v17 = vpop.eup %1361  ;;  %990 = vst [vmem:[%s1837_s22 + $0x238] sm:$0xff] %v862_v6  ;;  %v864_v18 = vadd.f32 %v1706_v3, %v735_v9  ;;  %v737_v19 = vmul.f32 %v1360_v13, %v1713_v8  ;;  %1379 = vtanh.f32 %v490_v1  ;;  %v365_v20 = vmul.f32 %v1711_v7, %v236_v4  ;;  %v248_v13 = vld [vmem:[%s1697_s7 + $0x328] sm:$0xff] }
  0xab   : > { %v1364_v21 = vpop.eup %1363  ;;  %991 = vst [vmem:[%s1837_s22 + $0x240] sm:$0xff] %v863_v14  ;;  %v865_v22 = vadd.f32 %v1706_v3, %v736_v15  ;;  %v738_v23 = vmul.f32 %v1362_v17, %v1713_v8  ;;  %1381 = vtanh.f32 %v491_v0  ;;  %v366_v24 = vmul.f32 %v1711_v7, %v237_v11 }
  0xac   : > { %v1366_v29 = vpop.eup %1365  ;;  %992 = vst [vmem:[%s1837_s22 + $0x248] sm:$0xff] %v864_v18  ;;  %v866_v25 = vadd.f32 %v1706_v3, %v737_v19  ;;  %v739_v30 = vmul.f32 %v1364_v21, %v1713_v8  ;;  %1383 = vtanh.f32 %v492_v10  ;;  %v494_v31 = vadd.f32 %v1718_v12, %v365_v20  ;;  %v249_v18 = vld [vmem:[%s1697_s7 + $0x330] sm:$0xff] }
  0xad   : > { %993 = vst [vmem:[%s1837_s22 + $0x250] sm:$0xff] %v865_v22  ;;  %v867_v34 = vadd.f32 %v1706_v3, %v738_v23  ;;  %v740_v26 = vmul.f32 %v1366_v29, %v1713_v8  ;;  %1385 = vtanh.f32 %v493_v16  ;;  %v495_v37 = vadd.f32 %v1718_v12, %v366_v24 }
  0xae   : > { %994 = vst [vmem:[%s1837_s22 + $0x258] sm:$0xff] %v866_v25  ;;  %v868_v39 = vadd.f32 %v1706_v3, %v739_v30  ;;  %1387 = vtanh.f32 %v494_v31  ;;  %v367_v35 = vmul.f32 %v1711_v7, %v238_v27  ;;  %v368_v42 = vmul.f32 %v1711_v7, %v239_v28 }
  0xaf   : > { %v1368_v44 = vpop.eup %1367  ;;  %995 = vst [vmem:[%s1837_s22 + $0x260] sm:$0xff] %v867_v34  ;;  %v869_v36 = vadd.f32 %v1706_v3, %v740_v26  ;;  %1389 = vtanh.f32 %v495_v37  ;;  %v369_v45 = vmul.f32 %v1711_v7, %v240_v32  ;;  %v370_v47 = vmul.f32 %v1711_v7, %v241_v33  ;;  %v250_v32 = vld [vmem:[%s1697_s7 + $0x338] sm:$0xff] }
  0xb0   : > { %v1370_v48 = vpop.eup %1369  ;;  %996 = vst [vmem:[%s1837_s22 + $0x268] sm:$0xff] %v868_v39  ;;  %v741_v49 = vmul.f32 %v1368_v44, %v1713_v8  ;;  %v496_v40 = vadd.f32 %v1718_v12, %v367_v35  ;;  %v497_v50 = vadd.f32 %v1718_v12, %v368_v42  ;;  %v371_v51 = vmul.f32 %v1711_v7, %v242_v38  ;;  %v251_v38 = vld [vmem:[%s1697_s7 + $0x340] sm:$0xff]  ;;  %v252_v44 = vld [vmem:[%s1697_s7 + $0x348] sm:$0xff] }
  0xb1   : > { %v1372_v52 = vpop.eup %1371  ;;  %997 = vst [vmem:[%s1837_s22 + $0x270] sm:$0xff] %v869_v36  ;;  %v742_v53 = vmul.f32 %v1370_v48, %v1713_v8  ;;  %v498_v41 = vadd.f32 %v1718_v12, %v369_v45  ;;  %v499_v54 = vadd.f32 %v1718_v12, %v370_v47  ;;  %v372_v55 = vmul.f32 %v1711_v7, %v243_v43  ;;  %v253_v36 = vld [vmem:[%s1697_s7 + $0x350] sm:$0xff] }
  0xb2   : > { %v1374_v57 = vpop.eup %1373  ;;  %v870_v58 = vadd.f32 %v1706_v3, %v741_v49  ;;  %v743_v60 = vmul.f32 %v1372_v52, %v1713_v8  ;;  %1391 = vtanh.f32 %v496_v40  ;;  %v500_v59 = vadd.f32 %v1718_v12, %v371_v51  ;;  %v254_v40 = vld [vmem:[%s1697_s7 + $0x358] sm:$0xff] }
  0xb3   : > { %v871_v63 = vadd.f32 %v1706_v3, %v742_v53  ;;  %v744_v1 = vmul.f32 %v1374_v57, %v1713_v8  ;;  %1393 = vtanh.f32 %v497_v50  ;;  %v501_v0 = vadd.f32 %v1718_v12, %v372_v55  ;;  %v255_v50 = vld [vmem:[%s1697_s7 + $0x360] sm:$0xff] }
  0xb4   : > { %998 = vst [vmem:[%s1837_s22 + $0x278] sm:$0xff] %v870_v58  ;;  %v872_v2 = vadd.f32 %v1706_v3, %v743_v60  ;;  %1395 = vtanh.f32 %v498_v41  ;;  %v373_v4 = vmul.f32 %v1711_v7, %v244_v56  ;;  %v374_v5 = vmul.f32 %v1711_v7, %v245_v46 }
  0xb5   : > { %v1376_v6 = vpop.eup %1375  ;;  %999 = vst [vmem:[%s1837_s22 + $0x280] sm:$0xff] %v871_v63  ;;  %v873_v9 = vadd.f32 %v1706_v3, %v744_v1  ;;  %1397 = vtanh.f32 %v499_v54  ;;  %v375_v10 = vmul.f32 %v1711_v7, %v246_v61  ;;  %v376_v11 = vmul.f32 %v1711_v7, %v247_v62  ;;  %v256_v61 = vld [vmem:[%s1697_s7 + $0x368] sm:$0xff] }
  0xb6   : > { %v1378_v14 = vpop.eup %1377  ;;  %1000 = vst [vmem:[%s1837_s22 + $0x288] sm:$0xff] %v872_v2  ;;  %v745_v15 = vmul.f32 %v1376_v6, %v1713_v8  ;;  %1399 = vtanh.f32 %v500_v59  ;;  %v502_v16 = vadd.f32 %v1718_v12, %v373_v4  ;;  %v503_v17 = vadd.f32 %v1718_v12, %v374_v5  ;;  %v257_v2 = vld [vmem:[%s1697_s7 + $0x370] sm:$0xff] }
  0xb7   : > { %v1380_v19 = vpop.eup %1379  ;;  %1001 = vst [vmem:[%s1837_s22 + $0x290] sm:$0xff] %v873_v9  ;;  %v746_v20 = vmul.f32 %v1378_v14, %v1713_v8  ;;  %1401 = vtanh.f32 %v501_v0  ;;  %v504_v21 = vadd.f32 %v1718_v12, %v375_v10  ;;  %v505_v22 = vadd.f32 %v1718_v12, %v376_v11 }
  0xb8   : > { %v1382_v23 = vpop.eup %1381  ;;  %v874_v24 = vadd.f32 %v1706_v3, %v745_v15  ;;  %v747_v27 = vmul.f32 %v1380_v19, %v1713_v8  ;;  %1403 = vtanh.f32 %v502_v16  ;;  %v377_v28 = vmul.f32 %v1711_v7, %v248_v13  ;;  %v258_v19 = vld [vmem:[%s1697_s7 + $0x378] sm:$0xff] }
  0xb9   : > { %v1384_v29 = vpop.eup %1383  ;;  %v875_v25 = vadd.f32 %v1706_v3, %v746_v20  ;;  %v748_v30 = vmul.f32 %v1382_v23, %v1713_v8  ;;  %1405 = vtanh.f32 %v503_v17  ;;  %v378_v31 = vmul.f32 %v1711_v7, %v249_v18 }
  0xba   : > { %v1386_v33 = vpop.eup %1385  ;;  %1002 = vst [vmem:[%s1837_s22 + $0x298] sm:$0xff] %v874_v24  ;;  %v876_v34 = vadd.f32 %v1706_v3, %v747_v27  ;;  %v749_v26 = vmul.f32 %v1384_v29, %v1713_v8  ;;  %1407 = vtanh.f32 %v504_v21  ;;  %v506_v37 = vadd.f32 %v1718_v12, %v377_v28  ;;  %v259_v24 = vld [vmem:[%s1697_s7 + $0x380] sm:$0xff] }
  0xbb   : > { %v1388_v39 = vpop.eup %1387  ;;  %1003 = vst [vmem:[%s1837_s22 + $0x2a0] sm:$0xff] %v875_v25  ;;  %v877_v35 = vadd.f32 %v1706_v3, %v748_v30  ;;  %v750_v42 = vmul.f32 %v1386_v33, %v1713_v8  ;;  %1409 = vtanh.f32 %v505_v22  ;;  %v507_v43 = vadd.f32 %v1718_v12, %v378_v31  ;;  %v260_v30 = vld [vmem:[%s1697_s7 + $0x388] sm:$0xff] }
  0xbc   : > { %v1390_v45 = vpop.eup %1389  ;;  %1004 = vst [vmem:[%s1837_s22 + $0x2a8] sm:$0xff] %v876_v34  ;;  %v878_v47 = vadd.f32 %v1706_v3, %v749_v26  ;;  %v751_v48 = vmul.f32 %v1388_v39, %v1713_v8  ;;  %1411 = vtanh.f32 %v506_v37  ;;  %v379_v49 = vmul.f32 %v1711_v7, %v250_v32  ;;  %v261_v26 = vld [vmem:[%s1697_s7 + $0x390] sm:$0xff] }
  0xbd   : > { %1005 = vst [vmem:[%s1837_s22 + $0x2b0] sm:$0xff] %v877_v35  ;;  %v879_v51 = vadd.f32 %v1706_v3, %v750_v42  ;;  %v752_v52 = vmul.f32 %v1390_v45, %v1713_v8  ;;  %1413 = vtanh.f32 %v507_v43  ;;  %v380_v53 = vmul.f32 %v1711_v7, %v251_v38 }
  0xbe   : > { %1006 = vst [vmem:[%s1837_s22 + $0x2b8] sm:$0xff] %v878_v47  ;;  %v880_v41 = vadd.f32 %v1706_v3, %v751_v48  ;;  %v508_v54 = vadd.f32 %v1718_v12, %v379_v49  ;;  %v381_v55 = vmul.f32 %v1711_v7, %v252_v44  ;;  %v382_v56 = vmul.f32 %v1711_v7, %v253_v36 }
  0xbf   : > { %v1392_v46 = vpop.eup %1391  ;;  %1007 = vst [vmem:[%s1837_s22 + $0x2c0] sm:$0xff] %v879_v51  ;;  %v881_v57 = vadd.f32 %v1706_v3, %v752_v52  ;;  %v509_v58 = vadd.f32 %v1718_v12, %v380_v53  ;;  %v383_v60 = vmul.f32 %v1711_v7, %v254_v40  ;;  %v384_v59 = vmul.f32 %v1711_v7, %v255_v50  ;;  %v262_v51 = vld [vmem:[%s1697_s7 + $0x398] sm:$0xff]  ;;  %v263_v52 = vld [vmem:[%s1697_s7 + $0x3a0] sm:$0xff] }
  0xc0   : > { %v1394_v62 = vpop.eup %1393  ;;  %1008 = vst [vmem:[%s1837_s22 + $0x2c8] sm:$0xff] %v880_v41  ;;  %v753_v63 = vmul.f32 %v1392_v46, %v1713_v8  ;;  %1415 = vtanh.f32 %v508_v54  ;;  %v510_v1 = vadd.f32 %v1718_v12, %v381_v55  ;;  %v511_v0 = vadd.f32 %v1718_v12, %v382_v56  ;;  %v264_v56 = vld [vmem:[%s1697_s7 + $0x3a8] sm:$0xff]  ;;  %v265_v46 = vld [vmem:[%s1697_s7 + $0x3b0] sm:$0xff] }
  0xc1   : > { %v1396_v4 = vpop.eup %1395  ;;  %1009 = vst [vmem:[%s1837_s22 + $0x2d0] sm:$0xff] %v881_v57  ;;  %v754_v5 = vmul.f32 %v1394_v62, %v1713_v8  ;;  %1417 = vtanh.f32 %v509_v58  ;;  %v512_v6 = vadd.f32 %v1718_v12, %v383_v60  ;;  %v513_v9 = vadd.f32 %v1718_v12, %v384_v59  ;;  %v266_v59 = vld [vmem:[%s1697_s7 + $0x3b8] sm:$0xff] }
  0xc2   : > { %v1398_v10 = vpop.eup %1397  ;;  %v882_v11 = vadd.f32 %v1706_v3, %v753_v63  ;;  %v755_v13 = vmul.f32 %v1396_v4, %v1713_v8  ;;  %1419 = vtanh.f32 %v510_v1  ;;  %v385_v14 = vmul.f32 %v1711_v7, %v256_v61  ;;  %v267_v1 = vld [vmem:[%s1697_s7 + $0x3c0] sm:$0xff] }
  0xc3   : > { %v1400_v15 = vpop.eup %1399  ;;  %v883_v16 = vadd.f32 %v1706_v3, %v754_v5  ;;  %v756_v17 = vmul.f32 %v1398_v10, %v1713_v8  ;;  %1421 = vtanh.f32 %v511_v0  ;;  %v386_v18 = vmul.f32 %v1711_v7, %v257_v2 }
  0xc4   : > { %v1402_v20 = vpop.eup %1401  ;;  %1010 = vst [vmem:[%s1837_s22 + $0x2d8] sm:$0xff] %v882_v11  ;;  %v884_v21 = vadd.f32 %v1706_v3, %v755_v13  ;;  %v757_v22 = vmul.f32 %v1400_v15, %v1713_v8  ;;  %1423 = vtanh.f32 %v512_v6  ;;  %v514_v23 = vadd.f32 %v1718_v12, %v385_v14 }
  0xc5   : > { %v1404_v27 = vpop.eup %1403  ;;  %1011 = vst [vmem:[%s1837_s22 + $0x2e0] sm:$0xff] %v883_v16  ;;  %v885_v28 = vadd.f32 %v1706_v3, %v756_v17  ;;  %v758_v29 = vmul.f32 %v1402_v20, %v1713_v8  ;;  %1425 = vtanh.f32 %v513_v9  ;;  %v515_v25 = vadd.f32 %v1718_v12, %v386_v18 }
  0xc6   : > { %v1406_v31 = vpop.eup %1405  ;;  %1012 = vst [vmem:[%s1837_s22 + $0x2e8] sm:$0xff] %v884_v21  ;;  %v886_v32 = vadd.f32 %v1706_v3, %v757_v22  ;;  %v759_v33 = vmul.f32 %v1404_v27, %v1713_v8  ;;  %1427 = vtanh.f32 %v514_v23  ;;  %v387_v34 = vmul.f32 %v1711_v7, %v258_v19  ;;  %v268_v19 = vld [vmem:[%s1697_s7 + $0x3c8] sm:$0xff] }
  0xc7   : > { %v1408_v37 = vpop.eup %1407  ;;  %1013 = vst [vmem:[%s1837_s22 + $0x2f0] sm:$0xff] %v885_v28  ;;  %v887_v38 = vadd.f32 %v1706_v3, %v758_v29  ;;  %v760_v39 = vmul.f32 %v1406_v31, %v1713_v8  ;;  %1429 = vtanh.f32 %v515_v25  ;;  %v388_v35 = vmul.f32 %v1711_v7, %v259_v24  ;;  %v269_v24 = vld [vmem:[%s1697_s7 + $0x3d0] sm:$0xff] }
  0xc8   : > { %v1410_v42 = vpop.eup %1409  ;;  %1014 = vst [vmem:[%s1837_s22 + $0x2f8] sm:$0xff] %v886_v32  ;;  %v888_v43 = vadd.f32 %v1706_v3, %v759_v33  ;;  %v761_v44 = vmul.f32 %v1408_v37, %v1713_v8  ;;  %v516_v36 = vadd.f32 %v1718_v12, %v387_v34  ;;  %v389_v45 = vmul.f32 %v1711_v7, %v260_v30 }
  0xc9   : > { %v1412_v47 = vpop.eup %1411  ;;  %1015 = vst [vmem:[%s1837_s22 + $0x300] sm:$0xff] %v887_v38  ;;  %v889_v48 = vadd.f32 %v1706_v3, %v760_v39  ;;  %v762_v49 = vmul.f32 %v1410_v42, %v1713_v8  ;;  %v517_v40 = vadd.f32 %v1718_v12, %v388_v35  ;;  %v390_v50 = vmul.f32 %v1711_v7, %v261_v26  ;;  %v270_v39 = vld [vmem:[%s1697_s7 + $0x3d8] sm:$0xff]  ;;  %v271_v35 = vld [vmem:[%s1697_s7 + $0x3e0] sm:$0xff] }
  0xca   : > { %v1414_v53 = vpop.eup %1413  ;;  %1016 = vst [vmem:[%s1837_s22 + $0x308] sm:$0xff] %v888_v43  ;;  %v890_v41 = vadd.f32 %v1706_v3, %v761_v44  ;;  %v763_v54 = vmul.f32 %v1412_v47, %v1713_v8  ;;  %1431 = vtanh.f32 %v516_v36  ;;  %v518_v55 = vadd.f32 %v1718_v12, %v389_v45  ;;  %v272_v45 = vld [vmem:[%s1697_s7 + $0x3e8] sm:$0xff]  ;;  %v273_v47 = vld [vmem:[%s1697_s7 + $0x3f0] sm:$0xff] }
  0xcb   : > { %1017 = vst [vmem:[%s1837_s22 + $0x310] sm:$0xff] %v889_v48  ;;  %v891_v57 = vadd.f32 %v1706_v3, %v762_v49  ;;  %v764_v58 = vmul.f32 %v1414_v53, %v1713_v8  ;;  %1433 = vtanh.f32 %v517_v40  ;;  %v519_v60 = vadd.f32 %v1718_v12, %v390_v50  ;;  %v274_v50 = vld [vmem:[%s1697_s7 + $0x3f8] sm:$0xff] }
  0xcc   : > { %1018 = vst [vmem:[%s1837_s22 + $0x318] sm:$0xff] %v890_v41  ;;  %v892_v61 = vadd.f32 %v1706_v3, %v763_v54  ;;  %1435 = vtanh.f32 %v518_v55  ;;  %v391_v62 = vmul.f32 %v1711_v7, %v262_v51  ;;  %v392_v63 = vmul.f32 %v1711_v7, %v263_v52 }
  0xcd   : > { %v1416_v0 = vpop.eup %1415  ;;  %1019 = vst [vmem:[%s1837_s22 + $0x320] sm:$0xff] %v891_v57  ;;  %v893_v2 = vadd.f32 %v1706_v3, %v764_v58  ;;  %1437 = vtanh.f32 %v519_v60  ;;  %v393_v4 = vmul.f32 %v1711_v7, %v264_v56  ;;  %v394_v5 = vmul.f32 %v1711_v7, %v265_v46 }
  0xce   : > { %v1418_v6 = vpop.eup %1417  ;;  %1020 = vst [vmem:[%s1837_s22 + $0x328] sm:$0xff] %v892_v61  ;;  %v765_v9 = vmul.f32 %v1416_v0, %v1713_v8  ;;  %v520_v10 = vadd.f32 %v1718_v12, %v391_v62  ;;  %v521_v11 = vadd.f32 %v1718_v12, %v392_v63  ;;  %v395_v13 = vmul.f32 %v1711_v7, %v266_v59 }
  0xcf   : > { %v1420_v14 = vpop.eup %1419  ;;  %1021 = vst [vmem:[%s1837_s22 + $0x330] sm:$0xff] %v893_v2  ;;  %v766_v15 = vmul.f32 %v1418_v6, %v1713_v8  ;;  %v522_v16 = vadd.f32 %v1718_v12, %v393_v4  ;;  %v523_v17 = vadd.f32 %v1718_v12, %v394_v5  ;;  %v396_v18 = vmul.f32 %v1711_v7, %v267_v1 }
  0xd0   : > { %v1422_v20 = vpop.eup %1421  ;;  %v894_v21 = vadd.f32 %v1706_v3, %v765_v9  ;;  %v767_v22 = vmul.f32 %v1420_v14, %v1713_v8  ;;  %1439 = vtanh.f32 %v520_v10  ;;  %v524_v23 = vadd.f32 %v1718_v12, %v395_v13 }
  0xd1   : > { %v1424_v27 = vpop.eup %1423  ;;  %v895_v28 = vadd.f32 %v1706_v3, %v766_v15  ;;  %v768_v29 = vmul.f32 %v1422_v20, %v1713_v8  ;;  %1441 = vtanh.f32 %v521_v11  ;;  %v525_v25 = vadd.f32 %v1718_v12, %v396_v18 }
  0xd2   : > { %v1426_v30 = vpop.eup %1425  ;;  %1022 = vst [vmem:[%s1837_s22 + $0x338] sm:$0xff] %v894_v21  ;;  %v896_v31 = vadd.f32 %v1706_v3, %v767_v22  ;;  %v769_v32 = vmul.f32 %v1424_v27, %v1713_v8  ;;  %1443 = vtanh.f32 %v522_v16  ;;  %v397_v33 = vmul.f32 %v1711_v7, %v268_v19 }
  0xd3   : > { %v1428_v34 = vpop.eup %1427  ;;  %1023 = vst [vmem:[%s1837_s22 + $0x340] sm:$0xff] %v895_v28  ;;  %v897_v26 = vadd.f32 %v1706_v3, %v768_v29  ;;  %v770_v37 = vmul.f32 %v1426_v30, %v1713_v8  ;;  %1445 = vtanh.f32 %v523_v17  ;;  %v398_v38 = vmul.f32 %v1711_v7, %v269_v24 }
  0xd4   : > { %v1430_v42 = vpop.eup %1429  ;;  %1024 = vst [vmem:[%s1837_s22 + $0x348] sm:$0xff] %v896_v31  ;;  %v898_v43 = vadd.f32 %v1706_v3, %v769_v32  ;;  %v771_v44 = vmul.f32 %v1428_v34, %v1713_v8  ;;  %1447 = vtanh.f32 %v524_v23  ;;  %v526_v36 = vadd.f32 %v1718_v12, %v397_v33 }
  0xd5   : > { %1025 = vst [vmem:[%s1837_s22 + $0x350] sm:$0xff] %v897_v26  ;;  %v899_v48 = vadd.f32 %v1706_v3, %v770_v37  ;;  %v772_v49 = vmul.f32 %v1430_v42, %v1713_v8  ;;  %1449 = vtanh.f32 %v525_v25  ;;  %v527_v40 = vadd.f32 %v1718_v12, %v398_v38 }
  0xd6   : > { %1026 = vst [vmem:[%s1837_s22 + $0x358] sm:$0xff] %v898_v43  ;;  %v900_v51 = vadd.f32 %v1706_v3, %v771_v44  ;;  %1451 = vtanh.f32 %v526_v36  ;;  %v399_v52 = vmul.f32 %v1711_v7, %v270_v39  ;;  %v400_v53 = vmul.f32 %v1711_v7, %v271_v35 }
  0xd7   : > { %v1432_v41 = vpop.eup %1431  ;;  %1027 = vst [vmem:[%s1837_s22 + $0x360] sm:$0xff] %v899_v48  ;;  %v901_v54 = vadd.f32 %v1706_v3, %v772_v49  ;;  %1453 = vtanh.f32 %v527_v40  ;;  %v401_v55 = vmul.f32 %v1711_v7, %v272_v45  ;;  %v402_v56 = vmul.f32 %v1711_v7, %v273_v47 }
  0xd8   : > { %v1434_v46 = vpop.eup %1433  ;;  %1028 = vst [vmem:[%s1837_s22 + $0x368] sm:$0xff] %v900_v51  ;;  %v773_v57 = vmul.f32 %v1432_v41, %v1713_v8  ;;  %v528_v58 = vadd.f32 %v1718_v12, %v399_v52  ;;  %v529_v60 = vadd.f32 %v1718_v12, %v400_v53  ;;  %v403_v59 = vmul.f32 %v1711_v7, %v274_v50 }
  0xd9   : > { %v1436_v61 = vpop.eup %1435  ;;  %1029 = vst [vmem:[%s1837_s22 + $0x370] sm:$0xff] %v901_v54  ;;  %v774_v62 = vmul.f32 %v1434_v46, %v1713_v8  ;;  %v530_v63 = vadd.f32 %v1718_v12, %v401_v55  ;;  %v531_v1 = vadd.f32 %v1718_v12, %v402_v56 }
  0xda   : > { %v1438_v0 = vpop.eup %1437  ;;  %v902_v2 = vadd.f32 %v1706_v3, %v773_v57  ;;  %v775_v4 = vmul.f32 %v1436_v61, %v1713_v8  ;;  %1455 = vtanh.f32 %v528_v58  ;;  %v532_v5 = vadd.f32 %v1718_v12, %v403_v59 }
  0xdb   : > { %v903_v7 = vadd.f32 %v1706_v3, %v774_v62  ;;  %v776_v6 = vmul.f32 %v1438_v0, %v1713_v8  ;;  %1457 = vtanh.f32 %v529_v60 }
  0xdc   : > { %1030 = vst [vmem:[%s1837_s22 + $0x378] sm:$0xff] %v902_v2  ;;  %v904_v9 = vadd.f32 %v1706_v3, %v775_v4  ;;  %1459 = vtanh.f32 %v530_v63 }
  0xdd   : > { %v1440_v10 = vpop.eup %1439  ;;  %1031 = vst [vmem:[%s1837_s22 + $0x380] sm:$0xff] %v903_v7  ;;  %v905_v11 = vadd.f32 %v1706_v3, %v776_v6  ;;  %1461 = vtanh.f32 %v531_v1 }
  0xde   : > { %v1442_v13 = vpop.eup %1441  ;;  %1032 = vst [vmem:[%s1837_s22 + $0x388] sm:$0xff] %v904_v9  ;;  %v777_v12 = vmul.f32 %v1440_v10, %v1713_v8  ;;  %1463 = vtanh.f32 %v532_v5 }
  0xdf   : > { %v1444_v14 = vpop.eup %1443  ;;  %1033 = vst [vmem:[%s1837_s22 + $0x390] sm:$0xff] %v905_v11  ;;  %v778_v15 = vmul.f32 %v1442_v13, %v1713_v8 }
  0xe0   : > { %v1446_v16 = vpop.eup %1445  ;;  %v906_v17 = vadd.f32 %v1706_v3, %v777_v12  ;;  %v779_v18 = vmul.f32 %v1444_v14, %v1713_v8 }
  0xe1   : > { %v1448_v19 = vpop.eup %1447  ;;  %v907_v20 = vadd.f32 %v1706_v3, %v778_v15  ;;  %v780_v21 = vmul.f32 %v1446_v16, %v1713_v8 }
  0xe2   : > { %v1450_v22 = vpop.eup %1449  ;;  %1034 = vst [vmem:[%s1837_s22 + $0x398] sm:$0xff] %v906_v17  ;;  %v908_v23 = vadd.f32 %v1706_v3, %v779_v18  ;;  %v781_v24 = vmul.f32 %v1448_v19, %v1713_v8 }
  0xe3   : > { %v1452_v27 = vpop.eup %1451  ;;  %1035 = vst [vmem:[%s1837_s22 + $0x3a0] sm:$0xff] %v907_v20  ;;  %v909_v28 = vadd.f32 %v1706_v3, %v780_v21  ;;  %v782_v29 = vmul.f32 %v1450_v22, %v1713_v8 }
  0xe4   : > { %v1454_v25 = vpop.eup %1453  ;;  %1036 = vst [vmem:[%s1837_s22 + $0x3a8] sm:$0xff] %v908_v23  ;;  %v910_v30 = vadd.f32 %v1706_v3, %v781_v24  ;;  %v783_v31 = vmul.f32 %v1452_v27, %v1713_v8 }
  0xe5   : > { %1037 = vst [vmem:[%s1837_s22 + $0x3b0] sm:$0xff] %v909_v28  ;;  %v911_v32 = vadd.f32 %v1706_v3, %v782_v29  ;;  %v784_v33 = vmul.f32 %v1454_v25, %v1713_v8 }
  0xe6   : > { %1038 = vst [vmem:[%s1837_s22 + $0x3b8] sm:$0xff] %v910_v30  ;;  %v912_v34 = vadd.f32 %v1706_v3, %v783_v31 }
  0xe7   : > { %v1456_v26 = vpop.eup %1455  ;;  %1039 = vst [vmem:[%s1837_s22 + $0x3c0] sm:$0xff] %v911_v32  ;;  %v913_v37 = vadd.f32 %v1706_v3, %v784_v33 }
  0xe8   : > { %v1458_v38 = vpop.eup %1457  ;;  %1040 = vst [vmem:[%s1837_s22 + $0x3c8] sm:$0xff] %v912_v34  ;;  %v785_v39 = vmul.f32 %v1456_v26, %v1713_v8 }
  0xe9   : > { %v1460_v35 = vpop.eup %1459  ;;  %1041 = vst [vmem:[%s1837_s22 + $0x3d0] sm:$0xff] %v913_v37  ;;  %v786_v42 = vmul.f32 %v1458_v38, %v1713_v8 }
  0xea   : > { %v1462_v43 = vpop.eup %1461  ;;  %v914_v44 = vadd.f32 %v1706_v3, %v785_v39  ;;  %v787_v36 = vmul.f32 %v1460_v35, %v1713_v8 }
  0xeb   : > { %v1464_v45 = vpop.eup %1463  ;;  %v915_v47 = vadd.f32 %v1706_v3, %v786_v42  ;;  %v788_v48 = vmul.f32 %v1462_v43, %v1713_v8 }
  0xec   : > { %1042 = vst [vmem:[%s1837_s22 + $0x3d8] sm:$0xff] %v914_v44  ;;  %v916_v49 = vadd.f32 %v1706_v3, %v787_v36  ;;  %v789_v40 = vmul.f32 %v1464_v45, %v1713_v8 }
  0xed   : > { %1043 = vst [vmem:[%s1837_s22 + $0x3e0] sm:$0xff] %v915_v47  ;;  %v917_v50 = vadd.f32 %v1706_v3, %v788_v48 }
  0xee   : > { %1044 = vst [vmem:[%s1837_s22 + $0x3e8] sm:$0xff] %v916_v49  ;;  %v918_v51 = vadd.f32 %v1706_v3, %v789_v40 }
  0xef   : > { %1045 = vst [vmem:[%s1837_s22 + $0x3f0] sm:$0xff] %v917_v50 }
  0xf0   : > { %1046 = vst [vmem:[%s1837_s22 + $0x3f8] sm:$0xff] %v918_v51 }
  0xf1   : > { %1514 = shalt.err (!%p1511_p10)
}
  0xf2   : > { %s1515_s26 = scalar_lea.hbm %s2529_s0, 16384  ;;  %s1519_s3 = scalar_lea.hbm %s2580_s2, 32768 }
  0xf3   : > { %p1516_p0 = scmp.ne.s32.totalorder %s2529_s0, %s1515_s26  ;;  %p1520_p1 = scmp.lt.s32.totalorder %s2529_s0, %s2580_s2 }
  0xf4   : > { %p1521_p3 = scmp.lt.s32.totalorder %s1519_s3, %s1515_s26 }
  0xf5   : > { %p1517_p2 = pnand %p1516_p0, %p2589_p12 }
  0xf6   : > { %p1522_p6 = por %p1521_p3, %p1520_p1 }
  0xf7   : > { %p1518_p9 = pneg %p1517_p2 }
  0xf9   : > { %p1523_p11 = pnand %p1522_p6, %p1518_p9 }
  0xfb   : > { %1526 = shalt.err (!%p1523_p11)
}
  0xfc   : > { %s1574_s4 = smov 2048   ;;  %s1575_s5 = smov 128  }
  0xfd   : > { %1160 = dma.vmem_to_hbm [thread:$0]  (%p2589_p12), %s2531_s9, 16384, %s2529_s0, %s1048_s16, %s1574_s4, %s1574_s4, %s1575_s5  }
  0xfe PF: > { %s1077_s6 = sand.u32 1, %s1555_s12   ;;  %p2590_p13 = scmp.ne.s32.totalorder %s2586_s24, 0 }
  0xff   : > { %p2591_p4 = scmp.ge.s32.totalorder %s1567_s15, 2  ;;  %s1078_s22 = scalar_lea.sflag [#allocation6], %s1077_s6 }
 0x101   : > { %p1167_p5 = pnand %p2591_p4, %p2590_p13 }
 0x103   : > { %p1168_p7 = pneg %p1167_p5 }
 0x105   : > { %1550 = dma.done.wait (%p1168_p7), %s1078_s22, 16384  }
 0x106   : > { %1552 = vsyncadd (%p1168_p7), %s1078_s22, 4294950912  ;;  %p19_p8 = scmp.ge.s32.totalorder %s1619_s17, 4   ;;  %s2592_s12 = smov %s1559_s13 }
 0x107   : > { %s2593_s13 = smov %s1563_s14  ;;  %s2594_s14 = smov %s1631_s20 }
 0x108   : > { %s2595_s15 = smov %s1619_s17  ;;  %21 = sbr.rel (!%p19_p8) target bundleno = 10 (0xa), region = 69 }
 0x10d   :  { %1083 = vsyncpa [#allocation5], 1 }
 0x10e   :  { %1085 = vsyncpa [#allocation5 + $0x1], 1 }
 0x10f   :  { %1086 = vsyncpa [#allocation6], 1 }
 0x110   :  { %1088 = vsyncpa [#allocation6 + $0x1], 1 }

</bundles_post_ra>
